<compile_context>
chip_gen: v7x
topology: tpu7x:2x2x1
jax: 0.10.0
libtpu: 0.0.40
codegen_flags: <defaults>
</compile_context>

<pallas_src>
import functools

import numpy as np
import jax
import jax.numpy as jnp
from jax.experimental import pallas as pl
from jax.experimental.pallas import tpu as pltpu


# ----- fixed SRM filters (non-learnable by default in the PyTorch module) -----
_F1 = np.asarray([[0, 0, 0, 0, 0],
                  [0, -1, 2, -1, 0],
                  [0, 2, -4, 2, 0],
                  [0, -1, 2, -1, 0],
                  [0, 0, 0, 0, 0]], dtype=np.float64) / 4.0
_F2 = np.asarray([[-1, 2, -2, 2, -1],
                  [2, -6, 8, -6, 2],
                  [-2, 8, -12, 8, -2],
                  [2, -6, 8, -6, 2],
                  [-1, 2, -2, 2, -1]], dtype=np.float64) / 12.0
_F3 = np.asarray([[0, 0, 0, 0, 0],
                  [0, 0, 0, 0, 0],
                  [0, 1, -2, 1, 0],
                  [0, 0, 0, 0, 0],
                  [0, 0, 0, 0, 0]], dtype=np.float64) / 2.0
SRM_FILTERS = (_F1.astype(np.float32), _F2.astype(np.float32), _F3.astype(np.float32))


def _srm_kernel(x_ref, w1_ref, bias_ref, o_ref, xpad_ref, *,
                outc, H, W, chan_ranges, col_off):
    """One image per grid step.

    x_ref   : (1, inc, S)  input image, spatial dims flattened (lane-dense)
    w1_ref  : (outc, K)    deduped 1x1 weights with BN scale folded in
    bias_ref: (outc, 1)    BN bias (beta - mean * gamma / sqrt(var + eps))
    o_ref   : (1, outc, S) output, lane-dense
    xpad_ref: (inc, S + 2*PAD) f32 scratch holding the flattened, zero-padded image
    """
    S = H * W
    PAD = 2 * W + 2            # max |flat shift| of a 5x5 tap = 2*W + 2
    f32 = jnp.float32

    # ---- in-kernel zero padding (replaces the wrapper-side jnp.pad HBM pass) ----
    xpad_ref[...] = jnp.zeros(xpad_ref.shape, f32)
    xpad_ref[:, PAD:PAD + S] = x_ref[0].astype(f32)

    # lane -> image-column index, used to mask horizontal (row-crossing) taps.
    col = jax.lax.broadcasted_iota(jnp.int32, (1, S), 1) % W

    # One accumulator per SRM filter, covering only the channels that use it.
    accs = [jnp.zeros((hi - lo + 1, S), f32) for (lo, hi) in chan_ranges]

    # ---- grouped 5x5 SRM conv, vectorized over channels, deduped planes only ----
    # Filter taps are compile-time constants, so this double loop fully unrolls
    # and zero taps are skipped at trace time.
    for dh in range(5):
        for dw in range(5):
            taps = [float(SRM_FILTERS[f][dh, dw]) for f in range(3)]
            if all(t == 0.0 for t in taps):
                continue
            b = dw - 2
            s = (dh - 2) * W + b           # flat-index shift of this tap
            for f, t in enumerate(taps):
                if t == 0.0:
                    continue
                lo, hi = chan_ranges[f]
                slab = xpad_ref[lo:hi + 1, PAD + s:PAD + s + S]   # (n_ch, S)
                # Vertical out-of-image taps already read zeros from the flat pad;
                # only horizontal taps need a column mask (they wrap across rows).
                if b > 0:
                    slab = jnp.where(col < (W - b), slab, 0.0)
                elif b < 0:
                    slab = jnp.where(col >= (-b), slab, 0.0)
                accs[f] = accs[f] + slab * t

    # ---- Hardtanh(-3, 3), then 1x1 conv (+ folded BN scale) as VPU MACs ----
    z = jnp.zeros((outc, S), f32)
    for f, (lo, hi) in enumerate(chan_ranges):
        yf = jnp.clip(accs[f], -3.0, 3.0)                 # Hardtanh(-3, 3)
        for j in range(hi - lo + 1):
            k = col_off[f] + j
            z = z + w1_ref[:, k:k + 1] * yf[j:j + 1, :]   # (outc,1) x (1,S) MAC

    z = jnp.maximum(z + bias_ref[...], 0.0)               # BN bias + ReLU
    o_ref[0] = z.astype(o_ref.dtype)                      # unmasked lane-dense store


def srm_conv2d_separate(x, w1, bn_gamma, bn_beta, bn_mean, bn_var, eps=1e-5):
    """x: (B, inc, H, W); w1: (outc, 3*inc, 1, 1) or (outc, 3*inc). Returns (B, outc, H, W)."""
    B, inc, H, W = x.shape
    outc = w1.shape[0]
    S = H * W
    PAD = 2 * W + 2

    # ---- one-time wrapper-side folding: dedup duplicate (channel, filter) planes
    #      and fold the BN scale into the 1x1 weights -------------------------------
    w1_2d = jnp.asarray(w1, jnp.float32).reshape(outc, 3 * inc)
    inv_std = (jnp.asarray(bn_gamma, jnp.float32) /
               jnp.sqrt(jnp.asarray(bn_var, jnp.float32) + eps))
    bias = (jnp.asarray(bn_beta, jnp.float32) -
            jnp.asarray(bn_mean, jnp.float32) * inv_std).reshape(outc, 1)

    # Channels used by filter f form a contiguous range (o in [f*inc, (f+1)*inc),
    # c = o // 3 is monotone over that range).
    chan_ranges = []
    for f in range(3):
        lo = (f * inc) // 3
        hi = ((f + 1) * inc - 1) // 3
        chan_ranges.append((lo, hi))

    col_off, sel_cols = [], []
    k = 0
    for f, (lo, hi) in enumerate(chan_ranges):
        col_off.append(k)
        for c in range(lo, hi + 1):
            sel = np.zeros((3 * inc,), np.float32)
            for o in range(3 * inc):
                if o // inc == f and o // 3 == c:
                    sel[o] = 1.0          # all duplicate output planes fold together
            sel_cols.append(sel)
            k += 1
    K = k
    M = jnp.asarray(np.stack(sel_cols, axis=1))          # (3*inc, K) fold matrix
    w1_eff = (w1_2d @ M) * inv_std[:, None]              # (outc, K), BN scale folded

    x_flat = x.reshape(B, inc, S)                        # free reshape (contiguous NCHW)

    kernel = functools.partial(_srm_kernel, outc=outc, H=H, W=W,
                               chan_ranges=tuple(chan_ranges), col_off=tuple(col_off))

    out_flat = pl.pallas_call(
        kernel,
        out_shape=jax.ShapeDtypeStruct((B, outc, S), x.dtype),
        grid_spec=pltpu.PrefetchScalarGridSpec(
            num_scalar_prefetch=0,
            grid=(B,),
            in_specs=[
                pl.BlockSpec((1, inc, S), lambda b: (b, 0, 0)),
                pl.BlockSpec((outc, K), lambda b: (0, 0)),
                pl.BlockSpec((outc, 1), lambda b: (0, 0)),
            ],
            out_specs=pl.BlockSpec((1, outc, S), lambda b: (b, 0, 0)),
            scratch_shapes=[pltpu.VMEM((inc, S + 2 * PAD), jnp.float32)],
        ),
        compiler_params=pltpu.CompilerParams(dimension_semantics=("parallel",)),
    )(x_flat, w1_eff, bias)

    return out_flat.reshape(B, outc, H, W)               # free reshape back to NCHW


def _reference_forward(x, inc, w1, bn_gamma, bn_beta, bn_mean, bn_var, eps=1e-5):
    """Pure-JAX reference mirroring the PyTorch forward (BN in eval mode)."""
    filters = np.stack(SRM_FILTERS)[:, None]          # (3, 1, 5, 5)
    filters = np.repeat(filters, inc, axis=0)         # (3*inc, 1, 5, 5)
    srm_w = jnp.asarray(filters, jnp.float32)
    y = jax.lax.conv_general_dilated(
        x.astype(jnp.float32), srm_w, window_strides=(1, 1),
        padding=((2, 2), (2, 2)),
        dimension_numbers=("NCHW", "OIHW", "NCHW"),
        feature_group_count=inc)
    y = jnp.clip(y, -3.0, 3.0)
    outc = w1.shape[0]
    z = jnp.einsum("oc,bchw->bohw", jnp.asarray(w1, jnp.float32).reshape(outc, -1), y)
    inv_std = bn_gamma / jnp.sqrt(bn_var + eps)
    z = z * inv_std.reshape(1, -1, 1, 1) + (bn_beta - bn_mean * inv_std).reshape(1, -1, 1, 1)
    return jnp.maximum(z, 0.0)


if __name__ == "__main__":
    B, inc, H, W = 2, 4, 16, 16
    outc = 8

    key = jax.random.PRNGKey(0)
    kx, kw = jax.random.split(key)

    x = jax.random.normal(kx, (B, inc, H, W), dtype=jnp.float32)

    # Conv2d(3*inc, outc, 1, bias=False) with kaiming_normal_(a=1):
    # gain = sqrt(2 / (1 + 1^2)) = 1, fan_in = 3*inc -> std = 1/sqrt(3*inc)
    w1 = jax.random.normal(kw, (outc, 3 * inc, 1, 1), dtype=jnp.float32) / jnp.sqrt(3.0 * inc)

    # Freshly-initialized BatchNorm2d parameters / running stats (eval mode).
    bn_gamma = jnp.ones((outc,), jnp.float32)
    bn_beta = jnp.zeros((outc,), jnp.float32)
    bn_mean = jnp.zeros((outc,), jnp.float32)
    bn_var = jnp.ones((outc,), jnp.float32)

    out = srm_conv2d_separate(x, w1, bn_gamma, bn_beta, bn_mean, bn_var)
    out = jax.block_until_ready(out)

    ref = _reference_forward(x, inc, w1, bn_gamma, bn_beta, bn_mean, bn_var)
    np.testing.assert_allclose(np.asarray(out), np.asarray(ref), rtol=1e-4, atol=1e-4)

    print("KERNEL_OK")
</pallas_src>

<mosaic_0001>
module attributes {stable_mosaic.version = 11 : i64} {
  func.func @_srm_kernel(%arg0: i32, %arg1: memref<1x4x256xf32, #tpu.memory_space<vmem>>, %arg2: memref<8x6xf32, #tpu.memory_space<vmem>>, %arg3: memref<8x1xf32, #tpu.memory_space<vmem>>, %arg4: memref<1x8x256xf32, #tpu.memory_space<vmem>>, %arg5: memref<4x324xf32, #tpu.memory_space<vmem>>) attributes {dimension_semantics = [#tpu.dimension_semantics<parallel>], iteration_bounds = array<i64: 2>, scalar_prefetch = 0 : i64, scratch_operands = 1 : i64, tpu.core_type = #tpu.core_type<tc>, window_params = [{transform_indices = @transform_0, window_bounds = array<i64: 1, 4, 256>}, {pipeline_mode = #tpu.pipeline_mode<synchronous>, transform_indices = @transform_1, window_bounds = array<i64: 8, 6>}, {pipeline_mode = #tpu.pipeline_mode<synchronous>, transform_indices = @transform_2, window_bounds = array<i64: 8, 1>}, {transform_indices = @transform_3, window_bounds = array<i64: 1, 8, 256>}]} {
    %cst = arith.constant 0.000000e+00 : f32
    %0 = vector.broadcast %cst : f32 to vector<4x324xf32>
    %c0 = arith.constant 0 : index
    %c0_0 = arith.constant 0 : index
    %1 = vector.load %arg5[%c0, %c0_0] : memref<4x324xf32, #tpu.memory_space<vmem>>, vector<4x324xf32>
    tpu.vector_store %arg5[%c0, %c0_0], %0 {strides = array<i32>} : memref<4x324xf32, #tpu.memory_space<vmem>>, vector<4x324xf32>,
    %c0_1 = arith.constant 0 : index
    %c0_2 = arith.constant 0 : index
    %c0_3 = arith.constant 0 : index
    %2 = vector.load %arg1[%c0_1, %c0_2, %c0_3] : memref<1x4x256xf32, #tpu.memory_space<vmem>>, vector<1x4x256xf32>
    %3 = vector.shape_cast %2 : vector<1x4x256xf32> to vector<4x256xf32>
    %c0_4 = arith.constant 0 : index
    %c34 = arith.constant 34 : index
    %4 = vector.load %arg5[%c0_4, %c34] : memref<4x324xf32, #tpu.memory_space<vmem>>, vector<4x256xf32>
    tpu.vector_store %arg5[%c0_4, %c34], %3 {strides = array<i32>} : memref<4x324xf32, #tpu.memory_space<vmem>>, vector<4x256xf32>,
    %5 = tpu.iota {dimensions = array<i32: 1>} : vector<1x256xi32>
    %c16_i32 = arith.constant 16 : i32
    %c0_i32 = arith.constant 0 : i32
    %6 = arith.cmpi eq, %c16_i32, %c0_i32 : i32
    %c1_i32 = arith.constant 1 : i32
    %7 = arith.select %6, %c1_i32, %c16_i32 : i32
    %8 = vector.broadcast %7 : i32 to vector<1x256xi32>
    %9 = arith.remsi %5, %8 : vector<1x256xi32>
    %c0_i32_5 = arith.constant 0 : i32
    %10 = vector.broadcast %c0_i32_5 : i32 to vector<1x256xi32>
    %11 = arith.cmpi ne, %9, %10 : vector<1x256xi32>
    %c0_i32_6 = arith.constant 0 : i32
    %12 = vector.broadcast %c0_i32_6 : i32 to vector<1x256xi32>
    %13 = arith.cmpi slt, %9, %12 : vector<1x256xi32>
    %c0_i32_7 = arith.constant 0 : i32
    %14 = arith.cmpi slt, %7, %c0_i32_7 : i32
    %15 = vector.broadcast %14 : i1 to vector<1x256xi1>
    %16 = vector.broadcast %15 : vector<1x256xi1> to vector<1x256xi1>
    %17 = arith.xori %13, %16 : vector<1x256xi1>
    %18 = arith.andi %17, %11 : vector<1x256xi1>
    %19 = vector.broadcast %7 : i32 to vector<1x256xi32>
    %20 = arith.addi %9, %19 : vector<1x256xi32>
    %21 = arith.select %18, %20, %9 : vector<1x256xi1>, vector<1x256xi32>
    %cst_8 = arith.constant 0.000000e+00 : f32
    %22 = vector.broadcast %cst_8 : f32 to vector<2x256xf32>
    %cst_9 = arith.constant 0.000000e+00 : f32
    %23 = vector.broadcast %cst_9 : f32 to vector<2x256xf32>
    %cst_10 = arith.constant 0.000000e+00 : f32
    %24 = vector.broadcast %cst_10 : f32 to vector<2x256xf32>
    %c1 = arith.constant 1 : index
    %c0_11 = arith.constant 0 : index
    %25 = vector.load %arg5[%c1, %c0_11] : memref<4x324xf32, #tpu.memory_space<vmem>>, vector<2x256xf32>
    %c2_i32 = arith.constant 2 : i32
    %26 = vector.broadcast %c2_i32 : i32 to vector<1x256xi32>
    %27 = arith.cmpi sge, %21, %26 : vector<1x256xi32>
    %cst_12 = arith.constant 0.000000e+00 : f32
    %28 = vector.shape_cast %27 : vector<1x256xi1> to vector<1x256xi1>
    %29 = vector.broadcast %28 : vector<1x256xi1> to vector<2x256xi1>
    %30 = vector.broadcast %cst_12 : f32 to vector<2x256xf32>
    %31 = arith.select %29, %25, %30 : vector<2x256xi1>, vector<2x256xf32>
    %cst_13 = arith.constant -0.0833333358 : f32
    %32 = vector.broadcast %cst_13 : f32 to vector<2x256xf32>
    %33 = arith.mulf %31, %32 : vector<2x256xf32>
    %34 = arith.addf %23, %33 : vector<2x256xf32>
    %c1_14 = arith.constant 1 : index
    %c1_15 = arith.constant 1 : index
    %35 = vector.load %arg5[%c1_14, %c1_15] : memref<4x324xf32, #tpu.memory_space<vmem>>, vector<2x256xf32>
    %c1_i32_16 = arith.constant 1 : i32
    %36 = vector.broadcast %c1_i32_16 : i32 to vector<1x256xi32>
    %37 = arith.cmpi sge, %21, %36 : vector<1x256xi32>
    %cst_17 = arith.constant 0.000000e+00 : f32
    %38 = vector.shape_cast %37 : vector<1x256xi1> to vector<1x256xi1>
    %39 = vector.broadcast %38 : vector<1x256xi1> to vector<2x256xi1>
    %40 = vector.broadcast %cst_17 : f32 to vector<2x256xf32>
    %41 = arith.select %39, %35, %40 : vector<2x256xi1>, vector<2x256xf32>
    %cst_18 = arith.constant 0.166666672 : f32
    %42 = vector.broadcast %cst_18 : f32 to vector<2x256xf32>
    %43 = arith.mulf %41, %42 : vector<2x256xf32>
    %44 = arith.addf %34, %43 : vector<2x256xf32>
    %c1_19 = arith.constant 1 : index
    %c2 = arith.constant 2 : index
    %45 = vector.load %arg5[%c1_19, %c2] : memref<4x324xf32, #tpu.memory_space<vmem>>, vector<2x256xf32>
    %cst_20 = arith.constant -0.166666672 : f32
    %46 = vector.broadcast %cst_20 : f32 to vector<2x256xf32>
    %47 = arith.mulf %45, %46 : vector<2x256xf32>
    %48 = arith.addf %44, %47 : vector<2x256xf32>
    %c1_21 = arith.constant 1 : index
    %c3 = arith.constant 3 : index
    %49 = vector.load %arg5[%c1_21, %c3] : memref<4x324xf32, #tpu.memory_space<vmem>>, vector<2x256xf32>
    %c15_i32 = arith.constant 15 : i32
    %50 = vector.broadcast %c15_i32 : i32 to vector<1x256xi32>
    %51 = arith.cmpi slt, %21, %50 : vector<1x256xi32>
    %cst_22 = arith.constant 0.000000e+00 : f32
    %52 = vector.shape_cast %51 : vector<1x256xi1> to vector<1x256xi1>
    %53 = vector.broadcast %52 : vector<1x256xi1> to vector<2x256xi1>
    %54 = vector.broadcast %cst_22 : f32 to vector<2x256xf32>
    %55 = arith.select %53, %49, %54 : vector<2x256xi1>, vector<2x256xf32>
    %cst_23 = arith.constant 0.166666672 : f32
    %56 = vector.broadcast %cst_23 : f32 to vector<2x256xf32>
    %57 = arith.mulf %55, %56 : vector<2x256xf32>
    %58 = arith.addf %48, %57 : vector<2x256xf32>
    %c1_24 = arith.constant 1 : index
    %c4 = arith.constant 4 : index
    %59 = vector.load %arg5[%c1_24, %c4] : memref<4x324xf32, #tpu.memory_space<vmem>>, vector<2x256xf32>
    %c14_i32 = arith.constant 14 : i32
    %60 = vector.broadcast %c14_i32 : i32 to vector<1x256xi32>
    %61 = arith.cmpi slt, %21, %60 : vector<1x256xi32>
    %cst_25 = arith.constant 0.000000e+00 : f32
    %62 = vector.shape_cast %61 : vector<1x256xi1> to vector<1x256xi1>
    %63 = vector.broadcast %62 : vector<1x256xi1> to vector<2x256xi1>
    %64 = vector.broadcast %cst_25 : f32 to vector<2x256xf32>
    %65 = arith.select %63, %59, %64 : vector<2x256xi1>, vector<2x256xf32>
    %cst_26 = arith.constant -0.0833333358 : f32
    %66 = vector.broadcast %cst_26 : f32 to vector<2x256xf32>
    %67 = arith.mulf %65, %66 : vector<2x256xf32>
    %68 = arith.addf %58, %67 : vector<2x256xf32>
    %c1_27 = arith.constant 1 : index
    %c16 = arith.constant 16 : index
    %69 = vector.load %arg5[%c1_27, %c16] : memref<4x324xf32, #tpu.memory_space<vmem>>, vector<2x256xf32>
    %c2_i32_28 = arith.constant 2 : i32
    %70 = vector.broadcast %c2_i32_28 : i32 to vector<1x256xi32>
    %71 = arith.cmpi sge, %21, %70 : vector<1x256xi32>
    %cst_29 = arith.constant 0.000000e+00 : f32
    %72 = vector.shape_cast %71 : vector<1x256xi1> to vector<1x256xi1>
    %73 = vector.broadcast %72 : vector<1x256xi1> to vector<2x256xi1>
    %74 = vector.broadcast %cst_29 : f32 to vector<2x256xf32>
    %75 = arith.select %73, %69, %74 : vector<2x256xi1>, vector<2x256xf32>
    %cst_30 = arith.constant 0.166666672 : f32
    %76 = vector.broadcast %cst_30 : f32 to vector<2x256xf32>
    %77 = arith.mulf %75, %76 : vector<2x256xf32>
    %78 = arith.addf %68, %77 : vector<2x256xf32>
    %c0_31 = arith.constant 0 : index
    %c17 = arith.constant 17 : index
    %79 = vector.load %arg5[%c0_31, %c17] : memref<4x324xf32, #tpu.memory_space<vmem>>, vector<2x256xf32>
    %c1_i32_32 = arith.constant 1 : i32
    %80 = vector.broadcast %c1_i32_32 : i32 to vector<1x256xi32>
    %81 = arith.cmpi sge, %21, %80 : vector<1x256xi32>
    %cst_33 = arith.constant 0.000000e+00 : f32
    %82 = vector.shape_cast %81 : vector<1x256xi1> to vector<1x256xi1>
    %83 = vector.broadcast %82 : vector<1x256xi1> to vector<2x256xi1>
    %84 = vector.broadcast %cst_33 : f32 to vector<2x256xf32>
    %85 = arith.select %83, %79, %84 : vector<2x256xi1>, vector<2x256xf32>
    %cst_34 = arith.constant -2.500000e-01 : f32
    %86 = vector.broadcast %cst_34 : f32 to vector<2x256xf32>
    %87 = arith.mulf %85, %86 : vector<2x256xf32>
    %88 = arith.addf %22, %87 : vector<2x256xf32>
    %c1_35 = arith.constant 1 : index
    %c17_36 = arith.constant 17 : index
    %89 = vector.load %arg5[%c1_35, %c17_36] : memref<4x324xf32, #tpu.memory_space<vmem>>, vector<2x256xf32>
    %c1_i32_37 = arith.constant 1 : i32
    %90 = vector.broadcast %c1_i32_37 : i32 to vector<1x256xi32>
    %91 = arith.cmpi sge, %21, %90 : vector<1x256xi32>
    %cst_38 = arith.constant 0.000000e+00 : f32
    %92 = vector.shape_cast %91 : vector<1x256xi1> to vector<1x256xi1>
    %93 = vector.broadcast %92 : vector<1x256xi1> to vector<2x256xi1>
    %94 = vector.broadcast %cst_38 : f32 to vector<2x256xf32>
    %95 = arith.select %93, %89, %94 : vector<2x256xi1>, vector<2x256xf32>
    %cst_39 = arith.constant -5.000000e-01 : f32
    %96 = vector.broadcast %cst_39 : f32 to vector<2x256xf32>
    %97 = arith.mulf %95, %96 : vector<2x256xf32>
    %98 = arith.addf %78, %97 : vector<2x256xf32>
    %c0_40 = arith.constant 0 : index
    %c18 = arith.constant 18 : index
    %99 = vector.load %arg5[%c0_40, %c18] : memref<4x324xf32, #tpu.memory_space<vmem>>, vector<2x256xf32>
    %cst_41 = arith.constant 5.000000e-01 : f32
    %100 = vector.broadcast %cst_41 : f32 to vector<2x256xf32>
    %101 = arith.mulf %99, %100 : vector<2x256xf32>
    %102 = arith.addf %88, %101 : vector<2x256xf32>
    %c1_42 = arith.constant 1 : index
    %c18_43 = arith.constant 18 : index
    %103 = vector.load %arg5[%c1_42, %c18_43] : memref<4x324xf32, #tpu.memory_space<vmem>>, vector<2x256xf32>
    %cst_44 = arith.constant 0.666666686 : f32
    %104 = vector.broadcast %cst_44 : f32 to vector<2x256xf32>
    %105 = arith.mulf %103, %104 : vector<2x256xf32>
    %106 = arith.addf %98, %105 : vector<2x256xf32>
    %c0_45 = arith.constant 0 : index
    %c19 = arith.constant 19 : index
    %107 = vector.load %arg5[%c0_45, %c19] : memref<4x324xf32, #tpu.memory_space<vmem>>, vector<2x256xf32>
    %c15_i32_46 = arith.constant 15 : i32
    %108 = vector.broadcast %c15_i32_46 : i32 to vector<1x256xi32>
    %109 = arith.cmpi slt, %21, %108 : vector<1x256xi32>
    %cst_47 = arith.constant 0.000000e+00 : f32
    %110 = vector.shape_cast %109 : vector<1x256xi1> to vector<1x256xi1>
    %111 = vector.broadcast %110 : vector<1x256xi1> to vector<2x256xi1>
    %112 = vector.broadcast %cst_47 : f32 to vector<2x256xf32>
    %113 = arith.select %111, %107, %112 : vector<2x256xi1>, vector<2x256xf32>
    %cst_48 = arith.constant -2.500000e-01 : f32
    %114 = vector.broadcast %cst_48 : f32 to vector<2x256xf32>
    %115 = arith.mulf %113, %114 : vector<2x256xf32>
    %116 = arith.addf %102, %115 : vector<2x256xf32>
    %c1_49 = arith.constant 1 : index
    %c19_50 = arith.constant 19 : index
    %117 = vector.load %arg5[%c1_49, %c19_50] : memref<4x324xf32, #tpu.memory_space<vmem>>, vector<2x256xf32>
    %c15_i32_51 = arith.constant 15 : i32
    %118 = vector.broadcast %c15_i32_51 : i32 to vector<1x256xi32>
    %119 = arith.cmpi slt, %21, %118 : vector<1x256xi32>
    %cst_52 = arith.constant 0.000000e+00 : f32
    %120 = vector.shape_cast %119 : vector<1x256xi1> to vector<1x256xi1>
    %121 = vector.broadcast %120 : vector<1x256xi1> to vector<2x256xi1>
    %122 = vector.broadcast %cst_52 : f32 to vector<2x256xf32>
    %123 = arith.select %121, %117, %122 : vector<2x256xi1>, vector<2x256xf32>
    %cst_53 = arith.constant -5.000000e-01 : f32
    %124 = vector.broadcast %cst_53 : f32 to vector<2x256xf32>
    %125 = arith.mulf %123, %124 : vector<2x256xf32>
    %126 = arith.addf %106, %125 : vector<2x256xf32>
    %c1_54 = arith.constant 1 : index
    %c20 = arith.constant 20 : index
    %127 = vector.load %arg5[%c1_54, %c20] : memref<4x324xf32, #tpu.memory_space<vmem>>, vector<2x256xf32>
    %c14_i32_55 = arith.constant 14 : i32
    %128 = vector.broadcast %c14_i32_55 : i32 to vector<1x256xi32>
    %129 = arith.cmpi slt, %21, %128 : vector<1x256xi32>
    %cst_56 = arith.constant 0.000000e+00 : f32
    %130 = vector.shape_cast %129 : vector<1x256xi1> to vector<1x256xi1>
    %131 = vector.broadcast %130 : vector<1x256xi1> to vector<2x256xi1>
    %132 = vector.broadcast %cst_56 : f32 to vector<2x256xf32>
    %133 = arith.select %131, %127, %132 : vector<2x256xi1>, vector<2x256xf32>
    %cst_57 = arith.constant 0.166666672 : f32
    %134 = vector.broadcast %cst_57 : f32 to vector<2x256xf32>
    %135 = arith.mulf %133, %134 : vector<2x256xf32>
    %136 = arith.addf %126, %135 : vector<2x256xf32>
    %c1_58 = arith.constant 1 : index
    %c32 = arith.constant 32 : index
    %137 = vector.load %arg5[%c1_58, %c32] : memref<4x324xf32, #tpu.memory_space<vmem>>, vector<2x256xf32>
    %c2_i32_59 = arith.constant 2 : i32
    %138 = vector.broadcast %c2_i32_59 : i32 to vector<1x256xi32>
    %139 = arith.cmpi sge, %21, %138 : vector<1x256xi32>
    %cst_60 = arith.constant 0.000000e+00 : f32
    %140 = vector.shape_cast %139 : vector<1x256xi1> to vector<1x256xi1>
    %141 = vector.broadcast %140 : vector<1x256xi1> to vector<2x256xi1>
    %142 = vector.broadcast %cst_60 : f32 to vector<2x256xf32>
    %143 = arith.select %141, %137, %142 : vector<2x256xi1>, vector<2x256xf32>
    %cst_61 = arith.constant -0.166666672 : f32
    %144 = vector.broadcast %cst_61 : f32 to vector<2x256xf32>
    %145 = arith.mulf %143, %144 : vector<2x256xf32>
    %146 = arith.addf %136, %145 : vector<2x256xf32>
    %c0_62 = arith.constant 0 : index
    %c33 = arith.constant 33 : index
    %147 = vector.load %arg5[%c0_62, %c33] : memref<4x324xf32, #tpu.memory_space<vmem>>, vector<2x256xf32>
    %c1_i32_63 = arith.constant 1 : i32
    %148 = vector.broadcast %c1_i32_63 : i32 to vector<1x256xi32>
    %149 = arith.cmpi sge, %21, %148 : vector<1x256xi32>
    %cst_64 = arith.constant 0.000000e+00 : f32
    %150 = vector.shape_cast %149 : vector<1x256xi1> to vector<1x256xi1>
    %151 = vector.broadcast %150 : vector<1x256xi1> to vector<2x256xi1>
    %152 = vector.broadcast %cst_64 : f32 to vector<2x256xf32>
    %153 = arith.select %151, %147, %152 : vector<2x256xi1>, vector<2x256xf32>
    %cst_65 = arith.constant 5.000000e-01 : f32
    %154 = vector.broadcast %cst_65 : f32 to vector<2x256xf32>
    %155 = arith.mulf %153, %154 : vector<2x256xf32>
    %156 = arith.addf %116, %155 : vector<2x256xf32>
    %c1_66 = arith.constant 1 : index
    %c33_67 = arith.constant 33 : index
    %157 = vector.load %arg5[%c1_66, %c33_67] : memref<4x324xf32, #tpu.memory_space<vmem>>, vector<2x256xf32>
    %c1_i32_68 = arith.constant 1 : i32
    %158 = vector.broadcast %c1_i32_68 : i32 to vector<1x256xi32>
    %159 = arith.cmpi sge, %21, %158 : vector<1x256xi32>
    %cst_69 = arith.constant 0.000000e+00 : f32
    %160 = vector.shape_cast %159 : vector<1x256xi1> to vector<1x256xi1>
    %161 = vector.broadcast %160 : vector<1x256xi1> to vector<2x256xi1>
    %162 = vector.broadcast %cst_69 : f32 to vector<2x256xf32>
    %163 = arith.select %161, %157, %162 : vector<2x256xi1>, vector<2x256xf32>
    %cst_70 = arith.constant 0.666666686 : f32
    %164 = vector.broadcast %cst_70 : f32 to vector<2x256xf32>
    %165 = arith.mulf %163, %164 : vector<2x256xf32>
    %166 = arith.addf %146, %165 : vector<2x256xf32>
    %c2_71 = arith.constant 2 : index
    %c33_72 = arith.constant 33 : index
    %167 = vector.load %arg5[%c2_71, %c33_72] : memref<4x324xf32, #tpu.memory_space<vmem>>, vector<2x256xf32>
    %c1_i32_73 = arith.constant 1 : i32
    %168 = vector.broadcast %c1_i32_73 : i32 to vector<1x256xi32>
    %169 = arith.cmpi sge, %21, %168 : vector<1x256xi32>
    %cst_74 = arith.constant 0.000000e+00 : f32
    %170 = vector.shape_cast %169 : vector<1x256xi1> to vector<1x256xi1>
    %171 = vector.broadcast %170 : vector<1x256xi1> to vector<2x256xi1>
    %172 = vector.broadcast %cst_74 : f32 to vector<2x256xf32>
    %173 = arith.select %171, %167, %172 : vector<2x256xi1>, vector<2x256xf32>
    %cst_75 = arith.constant 5.000000e-01 : f32
    %174 = vector.broadcast %cst_75 : f32 to vector<2x256xf32>
    %175 = arith.mulf %173, %174 : vector<2x256xf32>
    %176 = arith.addf %24, %175 : vector<2x256xf32>
    %c0_76 = arith.constant 0 : index
    %c34_77 = arith.constant 34 : index
    %177 = vector.load %arg5[%c0_76, %c34_77] : memref<4x324xf32, #tpu.memory_space<vmem>>, vector<2x256xf32>
    %cst_78 = arith.constant -1.000000e+00 : f32
    %178 = vector.broadcast %cst_78 : f32 to vector<2x256xf32>
    %179 = arith.mulf %177, %178 : vector<2x256xf32>
    %180 = arith.addf %156, %179 : vector<2x256xf32>
    %c1_79 = arith.constant 1 : index
    %c34_80 = arith.constant 34 : index
    %181 = vector.load %arg5[%c1_79, %c34_80] : memref<4x324xf32, #tpu.memory_space<vmem>>, vector<2x256xf32>
    %cst_81 = arith.constant -1.000000e+00 : f32
    %182 = vector.broadcast %cst_81 : f32 to vector<2x256xf32>
    %183 = arith.mulf %181, %182 : vector<2x256xf32>
    %184 = arith.addf %166, %183 : vector<2x256xf32>
    %c2_82 = arith.constant 2 : index
    %c34_83 = arith.constant 34 : index
    %185 = vector.load %arg5[%c2_82, %c34_83] : memref<4x324xf32, #tpu.memory_space<vmem>>, vector<2x256xf32>
    %cst_84 = arith.constant -1.000000e+00 : f32
    %186 = vector.broadcast %cst_84 : f32 to vector<2x256xf32>
    %187 = arith.mulf %185, %186 : vector<2x256xf32>
    %188 = arith.addf %176, %187 : vector<2x256xf32>
    %c0_85 = arith.constant 0 : index
    %c35 = arith.constant 35 : index
    %189 = vector.load %arg5[%c0_85, %c35] : memref<4x324xf32, #tpu.memory_space<vmem>>, vector<2x256xf32>
    %c15_i32_86 = arith.constant 15 : i32
    %190 = vector.broadcast %c15_i32_86 : i32 to vector<1x256xi32>
    %191 = arith.cmpi slt, %21, %190 : vector<1x256xi32>
    %cst_87 = arith.constant 0.000000e+00 : f32
    %192 = vector.shape_cast %191 : vector<1x256xi1> to vector<1x256xi1>
    %193 = vector.broadcast %192 : vector<1x256xi1> to vector<2x256xi1>
    %194 = vector.broadcast %cst_87 : f32 to vector<2x256xf32>
    %195 = arith.select %193, %189, %194 : vector<2x256xi1>, vector<2x256xf32>
    %cst_88 = arith.constant 5.000000e-01 : f32
    %196 = vector.broadcast %cst_88 : f32 to vector<2x256xf32>
    %197 = arith.mulf %195, %196 : vector<2x256xf32>
    %198 = arith.addf %180, %197 : vector<2x256xf32>
    %c1_89 = arith.constant 1 : index
    %c35_90 = arith.constant 35 : index
    %199 = vector.load %arg5[%c1_89, %c35_90] : memref<4x324xf32, #tpu.memory_space<vmem>>, vector<2x256xf32>
    %c15_i32_91 = arith.constant 15 : i32
    %200 = vector.broadcast %c15_i32_91 : i32 to vector<1x256xi32>
    %201 = arith.cmpi slt, %21, %200 : vector<1x256xi32>
    %cst_92 = arith.constant 0.000000e+00 : f32
    %202 = vector.shape_cast %201 : vector<1x256xi1> to vector<1x256xi1>
    %203 = vector.broadcast %202 : vector<1x256xi1> to vector<2x256xi1>
    %204 = vector.broadcast %cst_92 : f32 to vector<2x256xf32>
    %205 = arith.select %203, %199, %204 : vector<2x256xi1>, vector<2x256xf32>
    %cst_93 = arith.constant 0.666666686 : f32
    %206 = vector.broadcast %cst_93 : f32 to vector<2x256xf32>
    %207 = arith.mulf %205, %206 : vector<2x256xf32>
    %208 = arith.addf %184, %207 : vector<2x256xf32>
    %c2_94 = arith.constant 2 : index
    %c35_95 = arith.constant 35 : index
    %209 = vector.load %arg5[%c2_94, %c35_95] : memref<4x324xf32, #tpu.memory_space<vmem>>, vector<2x256xf32>
    %c15_i32_96 = arith.constant 15 : i32
    %210 = vector.broadcast %c15_i32_96 : i32 to vector<1x256xi32>
    %211 = arith.cmpi slt, %21, %210 : vector<1x256xi32>
    %cst_97 = arith.constant 0.000000e+00 : f32
    %212 = vector.shape_cast %211 : vector<1x256xi1> to vector<1x256xi1>
    %213 = vector.broadcast %212 : vector<1x256xi1> to vector<2x256xi1>
    %214 = vector.broadcast %cst_97 : f32 to vector<2x256xf32>
    %215 = arith.select %213, %209, %214 : vector<2x256xi1>, vector<2x256xf32>
    %cst_98 = arith.constant 5.000000e-01 : f32
    %216 = vector.broadcast %cst_98 : f32 to vector<2x256xf32>
    %217 = arith.mulf %215, %216 : vector<2x256xf32>
    %218 = arith.addf %188, %217 : vector<2x256xf32>
    %c1_99 = arith.constant 1 : index
    %c36 = arith.constant 36 : index
    %219 = vector.load %arg5[%c1_99, %c36] : memref<4x324xf32, #tpu.memory_space<vmem>>, vector<2x256xf32>
    %c14_i32_100 = arith.constant 14 : i32
    %220 = vector.broadcast %c14_i32_100 : i32 to vector<1x256xi32>
    %221 = arith.cmpi slt, %21, %220 : vector<1x256xi32>
    %cst_101 = arith.constant 0.000000e+00 : f32
    %222 = vector.shape_cast %221 : vector<1x256xi1> to vector<1x256xi1>
    %223 = vector.broadcast %222 : vector<1x256xi1> to vector<2x256xi1>
    %224 = vector.broadcast %cst_101 : f32 to vector<2x256xf32>
    %225 = arith.select %223, %219, %224 : vector<2x256xi1>, vector<2x256xf32>
    %cst_102 = arith.constant -0.166666672 : f32
    %226 = vector.broadcast %cst_102 : f32 to vector<2x256xf32>
    %227 = arith.mulf %225, %226 : vector<2x256xf32>
    %228 = arith.addf %208, %227 : vector<2x256xf32>
    %c1_103 = arith.constant 1 : index
    %c48 = arith.constant 48 : index
    %229 = vector.load %arg5[%c1_103, %c48] : memref<4x324xf32, #tpu.memory_space<vmem>>, vector<2x256xf32>
    %c2_i32_104 = arith.constant 2 : i32
    %230 = vector.broadcast %c2_i32_104 : i32 to vector<1x256xi32>
    %231 = arith.cmpi sge, %21, %230 : vector<1x256xi32>
    %cst_105 = arith.constant 0.000000e+00 : f32
    %232 = vector.shape_cast %231 : vector<1x256xi1> to vector<1x256xi1>
    %233 = vector.broadcast %232 : vector<1x256xi1> to vector<2x256xi1>
    %234 = vector.broadcast %cst_105 : f32 to vector<2x256xf32>
    %235 = arith.select %233, %229, %234 : vector<2x256xi1>, vector<2x256xf32>
    %cst_106 = arith.constant 0.166666672 : f32
    %236 = vector.broadcast %cst_106 : f32 to vector<2x256xf32>
    %237 = arith.mulf %235, %236 : vector<2x256xf32>
    %238 = arith.addf %228, %237 : vector<2x256xf32>
    %c0_107 = arith.constant 0 : index
    %c49 = arith.constant 49 : index
    %239 = vector.load %arg5[%c0_107, %c49] : memref<4x324xf32, #tpu.memory_space<vmem>>, vector<2x256xf32>
    %c1_i32_108 = arith.constant 1 : i32
    %240 = vector.broadcast %c1_i32_108 : i32 to vector<1x256xi32>
    %241 = arith.cmpi sge, %21, %240 : vector<1x256xi32>
    %cst_109 = arith.constant 0.000000e+00 : f32
    %242 = vector.shape_cast %241 : vector<1x256xi1> to vector<1x256xi1>
    %243 = vector.broadcast %242 : vector<1x256xi1> to vector<2x256xi1>
    %244 = vector.broadcast %cst_109 : f32 to vector<2x256xf32>
    %245 = arith.select %243, %239, %244 : vector<2x256xi1>, vector<2x256xf32>
    %cst_110 = arith.constant -2.500000e-01 : f32
    %246 = vector.broadcast %cst_110 : f32 to vector<2x256xf32>
    %247 = arith.mulf %245, %246 : vector<2x256xf32>
    %248 = arith.addf %198, %247 : vector<2x256xf32>
    %c1_111 = arith.constant 1 : index
    %c49_112 = arith.constant 49 : index
    %249 = vector.load %arg5[%c1_111, %c49_112] : memref<4x324xf32, #tpu.memory_space<vmem>>, vector<2x256xf32>
    %c1_i32_113 = arith.constant 1 : i32
    %250 = vector.broadcast %c1_i32_113 : i32 to vector<1x256xi32>
    %251 = arith.cmpi sge, %21, %250 : vector<1x256xi32>
    %cst_114 = arith.constant 0.000000e+00 : f32
    %252 = vector.shape_cast %251 : vector<1x256xi1> to vector<1x256xi1>
    %253 = vector.broadcast %252 : vector<1x256xi1> to vector<2x256xi1>
    %254 = vector.broadcast %cst_114 : f32 to vector<2x256xf32>
    %255 = arith.select %253, %249, %254 : vector<2x256xi1>, vector<2x256xf32>
    %cst_115 = arith.constant -5.000000e-01 : f32
    %256 = vector.broadcast %cst_115 : f32 to vector<2x256xf32>
    %257 = arith.mulf %255, %256 : vector<2x256xf32>
    %258 = arith.addf %238, %257 : vector<2x256xf32>
    %c0_116 = arith.constant 0 : index
    %c50 = arith.constant 50 : index
    %259 = vector.load %arg5[%c0_116, %c50] : memref<4x324xf32, #tpu.memory_space<vmem>>, vector<2x256xf32>
    %cst_117 = arith.constant 5.000000e-01 : f32
    %260 = vector.broadcast %cst_117 : f32 to vector<2x256xf32>
    %261 = arith.mulf %259, %260 : vector<2x256xf32>
    %262 = arith.addf %248, %261 : vector<2x256xf32>
    %c1_118 = arith.constant 1 : index
    %c50_119 = arith.constant 50 : index
    %263 = vector.load %arg5[%c1_118, %c50_119] : memref<4x324xf32, #tpu.memory_space<vmem>>, vector<2x256xf32>
    %cst_120 = arith.constant 0.666666686 : f32
    %264 = vector.broadcast %cst_120 : f32 to vector<2x256xf32>
    %265 = arith.mulf %263, %264 : vector<2x256xf32>
    %266 = arith.addf %258, %265 : vector<2x256xf32>
    %c0_121 = arith.constant 0 : index
    %c51 = arith.constant 51 : index
    %267 = vector.load %arg5[%c0_121, %c51] : memref<4x324xf32, #tpu.memory_space<vmem>>, vector<2x256xf32>
    %c15_i32_122 = arith.constant 15 : i32
    %268 = vector.broadcast %c15_i32_122 : i32 to vector<1x256xi32>
    %269 = arith.cmpi slt, %21, %268 : vector<1x256xi32>
    %cst_123 = arith.constant 0.000000e+00 : f32
    %270 = vector.shape_cast %269 : vector<1x256xi1> to vector<1x256xi1>
    %271 = vector.broadcast %270 : vector<1x256xi1> to vector<2x256xi1>
    %272 = vector.broadcast %cst_123 : f32 to vector<2x256xf32>
    %273 = arith.select %271, %267, %272 : vector<2x256xi1>, vector<2x256xf32>
    %cst_124 = arith.constant -2.500000e-01 : f32
    %274 = vector.broadcast %cst_124 : f32 to vector<2x256xf32>
    %275 = arith.mulf %273, %274 : vector<2x256xf32>
    %276 = arith.addf %262, %275 : vector<2x256xf32>
    %c1_125 = arith.constant 1 : index
    %c51_126 = arith.constant 51 : index
    %277 = vector.load %arg5[%c1_125, %c51_126] : memref<4x324xf32, #tpu.memory_space<vmem>>, vector<2x256xf32>
    %c15_i32_127 = arith.constant 15 : i32
    %278 = vector.broadcast %c15_i32_127 : i32 to vector<1x256xi32>
    %279 = arith.cmpi slt, %21, %278 : vector<1x256xi32>
    %cst_128 = arith.constant 0.000000e+00 : f32
    %280 = vector.shape_cast %279 : vector<1x256xi1> to vector<1x256xi1>
    %281 = vector.broadcast %280 : vector<1x256xi1> to vector<2x256xi1>
    %282 = vector.broadcast %cst_128 : f32 to vector<2x256xf32>
    %283 = arith.select %281, %277, %282 : vector<2x256xi1>, vector<2x256xf32>
    %cst_129 = arith.constant -5.000000e-01 : f32
    %284 = vector.broadcast %cst_129 : f32 to vector<2x256xf32>
    %285 = arith.mulf %283, %284 : vector<2x256xf32>
    %286 = arith.addf %266, %285 : vector<2x256xf32>
    %c1_130 = arith.constant 1 : index
    %c52 = arith.constant 52 : index
    %287 = vector.load %arg5[%c1_130, %c52] : memref<4x324xf32, #tpu.memory_space<vmem>>, vector<2x256xf32>
    %c14_i32_131 = arith.constant 14 : i32
    %288 = vector.broadcast %c14_i32_131 : i32 to vector<1x256xi32>
    %289 = arith.cmpi slt, %21, %288 : vector<1x256xi32>
    %cst_132 = arith.constant 0.000000e+00 : f32
    %290 = vector.shape_cast %289 : vector<1x256xi1> to vector<1x256xi1>
    %291 = vector.broadcast %290 : vector<1x256xi1> to vector<2x256xi1>
    %292 = vector.broadcast %cst_132 : f32 to vector<2x256xf32>
    %293 = arith.select %291, %287, %292 : vector<2x256xi1>, vector<2x256xf32>
    %cst_133 = arith.constant 0.166666672 : f32
    %294 = vector.broadcast %cst_133 : f32 to vector<2x256xf32>
    %295 = arith.mulf %293, %294 : vector<2x256xf32>
    %296 = arith.addf %286, %295 : vector<2x256xf32>
    %c1_134 = arith.constant 1 : index
    %c64 = arith.constant 64 : index
    %297 = vector.load %arg5[%c1_134, %c64] : memref<4x324xf32, #tpu.memory_space<vmem>>, vector<2x256xf32>
    %c2_i32_135 = arith.constant 2 : i32
    %298 = vector.broadcast %c2_i32_135 : i32 to vector<1x256xi32>
    %299 = arith.cmpi sge, %21, %298 : vector<1x256xi32>
    %cst_136 = arith.constant 0.000000e+00 : f32
    %300 = vector.shape_cast %299 : vector<1x256xi1> to vector<1x256xi1>
    %301 = vector.broadcast %300 : vector<1x256xi1> to vector<2x256xi1>
    %302 = vector.broadcast %cst_136 : f32 to vector<2x256xf32>
    %303 = arith.select %301, %297, %302 : vector<2x256xi1>, vector<2x256xf32>
    %cst_137 = arith.constant -0.0833333358 : f32
    %304 = vector.broadcast %cst_137 : f32 to vector<2x256xf32>
    %305 = arith.mulf %303, %304 : vector<2x256xf32>
    %306 = arith.addf %296, %305 : vector<2x256xf32>
    %c1_138 = arith.constant 1 : index
    %c65 = arith.constant 65 : index
    %307 = vector.load %arg5[%c1_138, %c65] : memref<4x324xf32, #tpu.memory_space<vmem>>, vector<2x256xf32>
    %c1_i32_139 = arith.constant 1 : i32
    %308 = vector.broadcast %c1_i32_139 : i32 to vector<1x256xi32>
    %309 = arith.cmpi sge, %21, %308 : vector<1x256xi32>
    %cst_140 = arith.constant 0.000000e+00 : f32
    %310 = vector.shape_cast %309 : vector<1x256xi1> to vector<1x256xi1>
    %311 = vector.broadcast %310 : vector<1x256xi1> to vector<2x256xi1>
    %312 = vector.broadcast %cst_140 : f32 to vector<2x256xf32>
    %313 = arith.select %311, %307, %312 : vector<2x256xi1>, vector<2x256xf32>
    %cst_141 = arith.constant 0.166666672 : f32
    %314 = vector.broadcast %cst_141 : f32 to vector<2x256xf32>
    %315 = arith.mulf %313, %314 : vector<2x256xf32>
    %316 = arith.addf %306, %315 : vector<2x256xf32>
    %c1_142 = arith.constant 1 : index
    %c66 = arith.constant 66 : index
    %317 = vector.load %arg5[%c1_142, %c66] : memref<4x324xf32, #tpu.memory_space<vmem>>, vector<2x256xf32>
    %cst_143 = arith.constant -0.166666672 : f32
    %318 = vector.broadcast %cst_143 : f32 to vector<2x256xf32>
    %319 = arith.mulf %317, %318 : vector<2x256xf32>
    %320 = arith.addf %316, %319 : vector<2x256xf32>
    %c1_144 = arith.constant 1 : index
    %c67 = arith.constant 67 : index
    %321 = vector.load %arg5[%c1_144, %c67] : memref<4x324xf32, #tpu.memory_space<vmem>>, vector<2x256xf32>
    %c15_i32_145 = arith.constant 15 : i32
    %322 = vector.broadcast %c15_i32_145 : i32 to vector<1x256xi32>
    %323 = arith.cmpi slt, %21, %322 : vector<1x256xi32>
    %cst_146 = arith.constant 0.000000e+00 : f32
    %324 = vector.shape_cast %323 : vector<1x256xi1> to vector<1x256xi1>
    %325 = vector.broadcast %324 : vector<1x256xi1> to vector<2x256xi1>
    %326 = vector.broadcast %cst_146 : f32 to vector<2x256xf32>
    %327 = arith.select %325, %321, %326 : vector<2x256xi1>, vector<2x256xf32>
    %cst_147 = arith.constant 0.166666672 : f32
    %328 = vector.broadcast %cst_147 : f32 to vector<2x256xf32>
    %329 = arith.mulf %327, %328 : vector<2x256xf32>
    %330 = arith.addf %320, %329 : vector<2x256xf32>
    %c1_148 = arith.constant 1 : index
    %c68 = arith.constant 68 : index
    %331 = vector.load %arg5[%c1_148, %c68] : memref<4x324xf32, #tpu.memory_space<vmem>>, vector<2x256xf32>
    %c14_i32_149 = arith.constant 14 : i32
    %332 = vector.broadcast %c14_i32_149 : i32 to vector<1x256xi32>
    %333 = arith.cmpi slt, %21, %332 : vector<1x256xi32>
    %cst_150 = arith.constant 0.000000e+00 : f32
    %334 = vector.shape_cast %333 : vector<1x256xi1> to vector<1x256xi1>
    %335 = vector.broadcast %334 : vector<1x256xi1> to vector<2x256xi1>
    %336 = vector.broadcast %cst_150 : f32 to vector<2x256xf32>
    %337 = arith.select %335, %331, %336 : vector<2x256xi1>, vector<2x256xf32>
    %cst_151 = arith.constant -0.0833333358 : f32
    %338 = vector.broadcast %cst_151 : f32 to vector<2x256xf32>
    %339 = arith.mulf %337, %338 : vector<2x256xf32>
    %340 = arith.addf %330, %339 : vector<2x256xf32>
    %cst_152 = arith.constant 0.000000e+00 : f32
    %341 = vector.broadcast %cst_152 : f32 to vector<8x256xf32>
    %cst_153 = arith.constant -3.000000e+00 : f32
    %cst_154 = arith.constant 3.000000e+00 : f32
    %342 = vector.broadcast %cst_153 : f32 to vector<2x256xf32>
    %343 = arith.maximumf %342, %276 : vector<2x256xf32>
    %344 = vector.broadcast %cst_154 : f32 to vector<2x256xf32>
    %345 = arith.minimumf %344, %343 : vector<2x256xf32>
    %c0_155 = arith.constant 0 : index
    %c0_156 = arith.constant 0 : index
    %346 = vector.load %arg2[%c0_155, %c0_156] : memref<8x6xf32, #tpu.memory_space<vmem>>, vector<8x1xf32>
    %347 = vector.extract_strided_slice %345 {offsets = [0, 0], sizes = [1, 256], strides = [1, 1]} : vector<2x256xf32> to vector<1x256xf32>
    %348 = vector.broadcast %346 : vector<8x1xf32> to vector<8x256xf32>
    %349 = vector.broadcast %347 : vector<1x256xf32> to vector<8x256xf32>
    %350 = arith.mulf %348, %349 : vector<8x256xf32>
    %351 = arith.addf %341, %350 : vector<8x256xf32>
    %c0_157 = arith.constant 0 : index
    %c1_158 = arith.constant 1 : index
    %352 = vector.load %arg2[%c0_157, %c1_158] : memref<8x6xf32, #tpu.memory_space<vmem>>, vector<8x1xf32>
    %353 = vector.extract_strided_slice %345 {offsets = [1, 0], sizes = [1, 256], strides = [1, 1]} : vector<2x256xf32> to vector<1x256xf32>
    %354 = vector.broadcast %352 : vector<8x1xf32> to vector<8x256xf32>
    %355 = vector.broadcast %353 : vector<1x256xf32> to vector<8x256xf32>
    %356 = arith.mulf %354, %355 : vector<8x256xf32>
    %357 = arith.addf %351, %356 : vector<8x256xf32>
    %cst_159 = arith.constant -3.000000e+00 : f32
    %cst_160 = arith.constant 3.000000e+00 : f32
    %358 = vector.broadcast %cst_159 : f32 to vector<2x256xf32>
    %359 = arith.maximumf %358, %340 : vector<2x256xf32>
    %360 = vector.broadcast %cst_160 : f32 to vector<2x256xf32>
    %361 = arith.minimumf %360, %359 : vector<2x256xf32>
    %c0_161 = arith.constant 0 : index
    %c2_162 = arith.constant 2 : index
    %362 = vector.load %arg2[%c0_161, %c2_162] : memref<8x6xf32, #tpu.memory_space<vmem>>, vector<8x1xf32>
    %363 = vector.extract_strided_slice %361 {offsets = [0, 0], sizes = [1, 256], strides = [1, 1]} : vector<2x256xf32> to vector<1x256xf32>
    %364 = vector.broadcast %362 : vector<8x1xf32> to vector<8x256xf32>
    %365 = vector.broadcast %363 : vector<1x256xf32> to vector<8x256xf32>
    %366 = arith.mulf %364, %365 : vector<8x256xf32>
    %367 = arith.addf %357, %366 : vector<8x256xf32>
    %c0_163 = arith.constant 0 : index
    %c3_164 = arith.constant 3 : index
    %368 = vector.load %arg2[%c0_163, %c3_164] : memref<8x6xf32, #tpu.memory_space<vmem>>, vector<8x1xf32>
    %369 = vector.extract_strided_slice %361 {offsets = [1, 0], sizes = [1, 256], strides = [1, 1]} : vector<2x256xf32> to vector<1x256xf32>
    %370 = vector.broadcast %368 : vector<8x1xf32> to vector<8x256xf32>
    %371 = vector.broadcast %369 : vector<1x256xf32> to vector<8x256xf32>
    %372 = arith.mulf %370, %371 : vector<8x256xf32>
    %373 = arith.addf %367, %372 : vector<8x256xf32>
    %cst_165 = arith.constant -3.000000e+00 : f32
    %cst_166 = arith.constant 3.000000e+00 : f32
    %374 = vector.broadcast %cst_165 : f32 to vector<2x256xf32>
    %375 = arith.maximumf %374, %218 : vector<2x256xf32>
    %376 = vector.broadcast %cst_166 : f32 to vector<2x256xf32>
    %377 = arith.minimumf %376, %375 : vector<2x256xf32>
    %c0_167 = arith.constant 0 : index
    %c4_168 = arith.constant 4 : index
    %378 = vector.load %arg2[%c0_167, %c4_168] : memref<8x6xf32, #tpu.memory_space<vmem>>, vector<8x1xf32>
    %379 = vector.extract_strided_slice %377 {offsets = [0, 0], sizes = [1, 256], strides = [1, 1]} : vector<2x256xf32> to vector<1x256xf32>
    %380 = vector.broadcast %378 : vector<8x1xf32> to vector<8x256xf32>
    %381 = vector.broadcast %379 : vector<1x256xf32> to vector<8x256xf32>
    %382 = arith.mulf %380, %381 : vector<8x256xf32>
    %383 = arith.addf %373, %382 : vector<8x256xf32>
    %c0_169 = arith.constant 0 : index
    %c5 = arith.constant 5 : index
    %384 = vector.load %arg2[%c0_169, %c5] : memref<8x6xf32, #tpu.memory_space<vmem>>, vector<8x1xf32>
    %385 = vector.extract_strided_slice %377 {offsets = [1, 0], sizes = [1, 256], strides = [1, 1]} : vector<2x256xf32> to vector<1x256xf32>
    %386 = vector.broadcast %384 : vector<8x1xf32> to vector<8x256xf32>
    %387 = vector.broadcast %385 : vector<1x256xf32> to vector<8x256xf32>
    %388 = arith.mulf %386, %387 : vector<8x256xf32>
    %389 = arith.addf %383, %388 : vector<8x256xf32>
    %c0_170 = arith.constant 0 : index
    %c0_171 = arith.constant 0 : index
    %390 = vector.load %arg3[%c0_170, %c0_171] : memref<8x1xf32, #tpu.memory_space<vmem>>, vector<8x1xf32>
    %391 = vector.broadcast %390 : vector<8x1xf32> to vector<8x256xf32>
    %392 = arith.addf %389, %391 : vector<8x256xf32>
    %cst_172 = arith.constant 0.000000e+00 : f32
    %393 = vector.broadcast %cst_172 : f32 to vector<8x256xf32>
    %394 = arith.maximumf %392, %393 : vector<8x256xf32>
    %c0_173 = arith.constant 0 : index
    %c0_174 = arith.constant 0 : index
    %c0_175 = arith.constant 0 : index
    %395 = vector.load %arg4[%c0_173, %c0_174, %c0_175] : memref<1x8x256xf32, #tpu.memory_space<vmem>>, vector<1x8x256xf32>
    %396 = vector.shape_cast %395 : vector<1x8x256xf32> to vector<8x256xf32>
    %397 = vector.shape_cast %394 : vector<8x256xf32> to vector<1x8x256xf32>
    tpu.vector_store %arg4[%c0_173, %c0_174, %c0_175], %397 {strides = array<i32>} : memref<1x8x256xf32, #tpu.memory_space<vmem>>, vector<1x8x256xf32>,
    return
  }
  func.func @transform_0(%arg0: i32) -> (i32, i32, i32) {
    %c0_i32 = arith.constant 0 : i32
    %c0_i32_0 = arith.constant 0 : i32
    %c0_i32_1 = arith.constant 0 : i32
    return %arg0, %c0_i32, %c0_i32_0 : i32, i32, i32
  }
  func.func @transform_1(%arg0: i32) -> (i32, i32) {
    %c0_i32 = arith.constant 0 : i32
    %c0_i32_0 = arith.constant 0 : i32
    %c0_i32_1 = arith.constant 0 : i32
    return %c0_i32, %c0_i32_0 : i32, i32
  }
  func.func @transform_2(%arg0: i32) -> (i32, i32) {
    %c0_i32 = arith.constant 0 : i32
    %c0_i32_0 = arith.constant 0 : i32
    %c0_i32_1 = arith.constant 0 : i32
    return %c0_i32, %c0_i32_0 : i32, i32
  }
  func.func @transform_3(%arg0: i32) -> (i32, i32, i32) {
    %c0_i32 = arith.constant 0 : i32
    %c0_i32_0 = arith.constant 0 : i32
    %c0_i32_1 = arith.constant 0 : i32
    return %arg0, %c0_i32, %c0_i32_0 : i32, i32, i32
  }
}

</mosaic_0001>

<bundles_post_ra>
// kernel: tpu_custom_call.1
= control target key start
LH: loop header
LB: loop body
LE: loop exit
PB: predicated region body
PF: predicated region fallthrough
CT: control target
= control target key end

     0   :  { %8 = vsyncpa [#allocation4], 0  ;;  %s2275_s0 = inlined_call_operand.hbm [shape: f32[2,4,256], index: 0, kind: input, shape index: {}]   ;;  %s2276_s1 = inlined_call_operand.vmem [shape: f32[8,6], index: 1, kind: input, shape index: {}]   ;;  %s2277_s2 = inlined_call_operand.vmem [shape: f32[8,1], index: 2, kind: input, shape index: {}]   ;;  %s2278_s3 = inlined_call_operand.hbm [shape: f32[2,8,256], index: 3, kind: output, shape index: {}]  }
   0x1   :  { %10 = vsyncpa [#allocation4 + $0x1], 0 }
   0x2   :  { %11 = vsyncpa [#allocation5], 0 }
   0x3   :  { %13 = vsyncpa [#allocation5 + $0x1], 0  ;;  %s1361_s12 = smov 0   ;;  %s1363_s13 = smov 0  }
   0x4   :  { %s1365_s14 = smov 0   ;;  %s1367_s15 = smov 0  }
   0x5 LB: > { %s1382_s16 = sadd.s32 4294967295, %s1305_s15   ;;  %s1098_s17 = sadd.s32 4294967294, %s1305_s15   ;;  %s1305_s15 = sphi %s1367_s15, %s2317_s15   ;;  %s1301_s14 = sphi %s1365_s14, %s2316_s14   ;;  %s1297_s13 = sphi %s1363_s13, %s2315_s13   ;;  %s1293_s12 = sphi %s1361_s12, %s2314_s12  }
   0x6   : > { %s1386_s18 = sadd.s32 1, %s1305_s15   ;;  %s26_s19 = sadd.s32 1, %s1301_s14 }
   0x7   : > { %s23_s20 = ssub.s32 %s1305_s15, %s1386_s18  ;;  %p33_p0 = scmp.ne.s32.totalorder %s1301_s14, %s1297_s13 }
   0x8   : > { %p24_p1 = scmp.eq.s32.totalorder %s23_s20, 0  ;;  %p34_p2 = scmp.eq.s32.totalorder %s1305_s15, 0 }
   0x9   : > { %p39_p3 = scmp.ne.s32.totalorder %s1297_s13, %s1293_s12  ;;  %p40_p4 = scmp.eq.s32.totalorder %s1382_s16, 0 }
   0xa   : > { %s1398_s21 = scalar_select %p24_p1, %s1301_s14, %s26_s19  }
   0xb   : > { %p1400_p5 = por %p34_p2, %p33_p0  ;;  %p1404_p6 = por %p40_p4, %p39_p3 }
   0xc   : > { %p105_p7 = scmp.eq.s32.totalorder %s1382_s16, 1  ;;  %p111_p8 = scmp.eq.s32.totalorder %s1098_s17, 1 }
   0xd   : > { %p1132_p10 = scmp.lt.s32.totalorder %s1305_s15, 2  ;;  %s137_s26 = sand.u32 1, %s1301_s14  }
   0xe   : > { %p1411_p11 = por %p105_p7, %p33_p0  ;;  %p1415_p12 = por %p111_p8, %p39_p3 }
   0xf   : > { %s1118_s27 = sshll.u32 %s1305_s15, 7  ;;  %s1101_s28 = sshll.u32 %s137_s26, 3 }
  0x10   : > { %s2289_s24 = scalar_select %p1411_p11, 1, 0 }
  0x11   : > { %s2290_s25 = scalar_select %p1415_p12, 1, 0 }
  0x12   : > { %s1424_s4 = scalar_lea.hbm %s2275_s0, %s1118_s27  ;;  %s141_s5 = scalar_lea.vmem [#allocation3], %s1101_s28 }
  0x13   : > { %s149_s6 = sshll.u32 %s141_s5, 4  ;;  %p1428_p13 = pnand %p1132_p10, %p1400_p5  ;;  %s1432_s6 = int_to_ptr.vmem [resolvable:$true] %s149_s6 }
  0x14   : > { %s138_s8 = scalar_lea.sflag [#allocation4], %s137_s26  ;;  %s1209_s9 = scalar_lea.hbm %s1424_s4, 128 }
  0x15   : > { %p1210_p2 = scmp.ne.s32.totalorder %s1424_s4, %s1209_s9  ;;  %p1211_p3 = pneg %p1428_p13 }
  0x16   : > { %s1214_s17 = scalar_lea.hbm %s2275_s0, 256  ;;  %p1215_p5 = scmp.lt.u32.totalorder %s1424_s4, %s2275_s0 }
  0x17   : > { %p1212_p4 = pnand %p1211_p3, %p1210_p2  ;;  %p1216_p8 = scmp.lt.u32.totalorder %s1214_s17, %s1209_s9 }
  0x18   : > { %p1218_p9 = scmp.lt.u32.totalorder %s1209_s9, %s1424_s4 }
  0x19   : > { %p1213_p7 = pneg %p1212_p4  ;;  %p1217_p10 = por %p1216_p8, %p1215_p5 }
  0x1b   : > { %p1219_p0 = por %p1218_p9, %p1217_p10 }
  0x1d   : > { %p1220_p1 = pnand %p1219_p0, %p1213_p7 }
  0x1f   : > { %1223 = shalt.err (!%p1220_p1)
}
  0x20   : > { %s1224_s22 = scalar_lea.vmem %s1432_s6, 128  ;;  %s1307_s26 = smov [#allocation3]  }
  0x21   : > { %p1225_p2 = scmp.ne.s32.totalorder %s1432_s6, %s1224_s22  ;;  %s1229_s27 = sshll.u32 %s1307_s26, 4  ;;  %s1230_s27 = int_to_ptr.vmem [resolvable:$false] %s1229_s27 }
  0x22   : > { %s1231_s28 = scalar_lea.vmem %s1230_s27, 256  ;;  %p1232_p11 = scmp.lt.s32.totalorder %s1432_s6, %s1230_s27 }
  0x23   : > { %p1227_p4 = pnand %p1225_p2, %p1211_p3  ;;  %p1233_p5 = scmp.lt.s32.totalorder %s1231_s28, %s1224_s22 }
  0x25   : > { %p1228_p12 = pneg %p1227_p4  ;;  %p1234_p8 = por %p1233_p5, %p1232_p11 }
  0x27   : > { %p1235_p9 = pnand %p1234_p8, %p1228_p12 }
  0x29   : > { %1238 = shalt.err (!%p1235_p9)
}
  0x2a   : > { %1127 = dma.hbm_to_vmem [thread:$0]  (!%p1428_p13), %s1424_s4, 128, %s1432_s6, %s138_s8  }
  0x2b   : > { %p2292_p0 = scmp.lt.s32.totalorder %s1305_s15, 3  ;;  %p2293_p1 = scmp.ge.s32.totalorder %s1305_s15, 1 }
  0x2d   : > { %p155_p3 = pnand %p2293_p1, %p2292_p0 }
  0x2f   : > { %158 = sbr.rel (%p155_p3) target bundleno = 568 (0x238), region = 32 }
  0x36   : > { %s1466_s29 = sand.u32 1, %s1297_s13  }
  0x37   : > { %s1105_s30 = sshll.u32 %s1466_s29, 3  ;;  %s161_s5 = scalar_lea.sflag [#allocation4], %s1466_s29 }
  0x38   : > { %s164_s9 = scalar_lea.vmem [#allocation3], %s1105_s30 }
  0x39   : > { %1284 = dma.done.wait (%p1404_p6), %s161_s5, 128  }
  0x3a   : > { %1286 = vsyncadd (%p1404_p6), %s161_s5, 4294967168  ;;  %vm188_vm0 = vcmask 551936   ;;  %v1308_v0 = vmov 0.0   ;;  %v190_v1 = vld [vmem:[%s164_s9] sm:$0xff]  ;;  %s1309_s4 = smov 34   ;;  %vm199_vm1 = vcmask 1043728  }
  0x3b   : > { %187 = vst [vmem:[#allocation2] sm:$0xff] %v1308_v0  ;;  %189 = vst.msk [vmem:[#allocation2 + $0x8] sm:$0xf] %vm188_vm0, %v1308_v0  ;;  %192 = vrot.lane.b32.xlu0 %v190_v1, %s1309_s4  ;;  %vm200_vm2 = vcmask 1047556   ;;  %vm195_vm3 = vcmask 277504   ;;  %vm203_vm4 = vcmask 273408  }
  0x3c   : > { %vm201_vm5 = vmor %vm200_vm2, %vm199_vm1  ;;  %s1310_s23 = smov 111   ;;  %s1311_s6 = smov 127   ;;  %v1325_v29 = vmov 1   ;;  %v2281_v32 = vmov 0   ;;  %vm625_vm6 = vcmask 760832   ;;  %vm310_vm7 = vcmask 1022976  }
  0x3d   : > { %s1312_s7 = smov 109   ;;  %s1313_s8 = smov 125   ;;  %1199 = vset.pattern.permute.xlu0 %v1325_v29  ;;  %1198 = vset.pattern.permute.xlu1 %v2281_v32  ;;  %vm350_vm8 = vcmask 916480   ;;  %vm372_vm9 = vcmask 908288   ;;  %vm266_vm10 = vcmask 1039360   ;;  %vm443_vm11 = vcmask 891904  }
  0x3e   : > { %s1314_s10 = smov 95   ;;  %s1315_s11 = smov 112   ;;  %vm333_vm15 = vcmask 1014784   ;;  %vm510_vm0 = vcmask 777216   ;;  %vm2284_vm2 = vcmask 785408  }
  0x3f   : > { %s1316_s17 = smov 93   ;;  %s1317_s19 = smov 96  }
  0x40   : > { %s1318_s20 = smov 94   ;;  %s1319_s22 = smov 124  }
  0x41   : > { %s1320_s26 = smov 110   ;;  %s1321_s27 = smov 92  }
  0x42   : > { %s1322_s28 = smov 108   ;;  %s1323_s30 = smov 80  }
  0x43   : > { %s1324_s5 = smov 126   ;;  %s1327_s9 = smov 79  }
  0x44   : > { %s1328_s4 = smov 77   ;;  %p2311_p11 = scmp.ne.s32.totalorder %s2289_s24, 0 }
  0xad   : > { %v193_v2 = vpop.permute.xlu0 %192 }
  0xae   : > { %v194_v3 = vrot.slane %v193_v2, 4 }
  0xb0   : > { %v196_v4 = vsel %vm195_vm3, %v194_v3, %v193_v2  ;;  %204 = vst.msk [vmem:[#allocation2 + $0x8] sm:$0xf] %vm203_vm4, %v194_v3  ;;  %vm2283_vm3 = vcmask 900096   ;;  %vm572_vm4 = vcmask 769024  }
  0xb1   : > { %202 = vst.msk [vmem:[#allocation2] sm:$0xff] %vm201_vm5, %v196_v4  ;;  %vm2285_vm5 = vcmask 883712  }
  0xb7   : > { %v1474_v5 = vld [vmem:[#allocation2 + $0x8] sm:$0x6] }
  0xb8   : > { %v1476_v6 = vld [vmem:[#allocation2 + $0x8] sm:$0x3]  ;;  %v1479_v7 = vrot.slane %v1474_v5, 1  ;;  %v1497_v8 = vld [vmem:[#allocation2] sm:$0x33]  ;;  %v580_v22 = vmul.f32 -1.0, %v1474_v5 }
  0xb9   : > { %370 = vrot.lane.b32.xlu0 %v1476_v6, %s1310_s23  ;;  %v562_v9 = vmul.f32 -1.0, %v1476_v6  ;;  %v1520_v10 = vmul.f32 0.5, %v1476_v6  ;;  %v1524_v11 = vld [vmem:[#allocation2] sm:$0x66]  ;;  %v538_v12 = vld [vmem:[#allocation2 + $0x8] sm:$0xc]  ;;  %v1541_v15 = vcombine.high %v1497_v8, %v1497_v8 }
  0xba   : > { %264 = vrot.lane.b32.xlu1 %v1479_v7, %s1311_s6  ;;  %v1529_v13 = vrot.slane %v1524_v11, 1  ;;  %v544_v14 = vrot.slane %v538_v12, 2  ;;  %v1554_v16 = vmul.f32 0.5, %v1497_v8  ;;  %v537_v17 = vld [vmem:[#allocation2] sm:$0xcc]  ;;  %v561_v20 = vmul.f32 -1.0, %v1497_v8 }
  0xbb   : > { %v542_v18 = vrot.slane %v537_v17, 2  ;;  %v1571_v19 = vmul.f32 -0.16666667, %v1474_v5  ;;  %v586_v23 = vrot.slane %v580_v22, 1  ;;  %v1585_v24 = vmul.f32 -0.16666667, %v1524_v11 }
  0xbc   : > { %v240_v25 = vcombine.high %v1524_v11, %v1524_v11  ;;  %v1597_v27 = vmul.f32 0.6666667, %v1474_v5  ;;  %v600_v31 = vmul.f32 -1.0, %v538_v12  ;;  %v1625_v34 = vcombine.high %v1554_v16, %v1554_v16 }
  0xbd   : > { %441 = vrot.lane.b32.xlu0 %v1476_v6, %s1312_s7  ;;  %v284_v21 = vrot.slane %v1571_v19, 1  ;;  %v282_v26 = vrot.slane %v1585_v24, 1  ;;  %v1628_v35 = vmul.f32 0.6666667, %v1524_v11  ;;  %v565_v38 = vcombine.high %v561_v20, %v561_v20 }
  0xbe   : > { %308 = vrot.lane.b32.xlu1 %v1479_v7, %s1313_s8  ;;  %v1599_v28 = vrot.slane %v240_v25, 1  ;;  %v424_v30 = vrot.slane %v1597_v27, 1  ;;  %v606_v33 = vrot.slane %v600_v31, 2  ;;  %v579_v39 = vmul.f32 -1.0, %v1524_v11 }
  0xbf   : > { %v422_v36 = vrot.slane %v1628_v35, 1  ;;  %v541_v41 = vcombine.high %v537_v17, %v537_v17  ;;  %v599_v46 = vmul.f32 -1.0, %v537_v17  ;;  %v421_v51 = vcombine.high %v1628_v35, %v1628_v35 }
  0xc0   : > { %v584_v43 = vrot.slane %v579_v39, 1  ;;  %v281_v57 = vcombine.high %v1585_v24, %v1585_v24  ;;  %v583_v62 = vcombine.high %v579_v39, %v579_v39 }
  0xc1   : > { %508 = vrot.lane.b32.xlu0 %v1476_v6, %s1314_s10  ;;  %v543_v45 = vrot.slane %v541_v41, 2  ;;  %v604_v49 = vrot.slane %v599_v46, 2  ;;  %v423_v54 = vrot.slane %v421_v51, 1  ;;  %v603_v55 = vcombine.high %v599_v46, %v599_v46 }
  0xc2   : > { %348 = vrot.lane.b32.xlu1 %v1479_v7, %s1315_s11  ;;  %v1680_v61 = vrot.slane %v281_v57, 1  ;;  %v585_v1 = vrot.slane %v583_v62, 1  ;;  %v1836_v62 = vld [vmem:[%s2276_s1] sm:$0xff] }
  0xc3   : > { %v605_v59 = vrot.slane %v603_v55, 2 }
  0xc5   : > { %623 = vrot.lane.b32.xlu0 %v1476_v6, %s1316_s17 }
  0xc6   : > { %387 = vrot.lane.b32.xlu1 %v1479_v7, %s1310_s23 }
  0xc9   : > { %366 = vrot.lane.b32.xlu0 %v1497_v8, %s1310_s23 }
  0xca   : > { %458 = vrot.lane.b32.xlu1 %v1479_v7, %s1312_s7 }
  0xcd   : > { %437 = vrot.lane.b32.xlu0 %v1497_v8, %s1312_s7 }
  0xce   : > { %491 = vrot.lane.b32.xlu1 %v1479_v7, %s1317_s19 }
  0xd1   : > { %504 = vrot.lane.b32.xlu0 %v1497_v8, %s1314_s10 }
  0xd2   : > { %525 = vrot.lane.b32.xlu1 %v1479_v7, %s1314_s10 }
  0xd5   : > { %619 = vrot.lane.b32.xlu0 %v1497_v8, %s1316_s17 }
  0xd6   : > { %570 = vrot.lane.b32.xlu1 %v562_v9, %s1318_s20 }
  0xd9   : > { %331 = vrot.lane.b32.xlu0 %v1479_v7, %s1319_s22 }
  0xda   : > { %640 = vrot.lane.b32.xlu1 %v1479_v7, %s1316_s17 }
  0xdd   : > { %408 = vrot.lane.b32.xlu0 %v1520_v10, %s1320_s26 }
  0xde   : > { %672 = vrot.lane.b32.xlu1 %v1479_v7, %s1321_s27 }
  0xe1   : > { %474 = vrot.lane.b32.xlu0 %v1479_v7, %s1322_s28 }
  0xe2   : > { %304 = vrot.lane.b32.xlu1 %v1529_v13, %s1313_s8 }
  0xe5   : > { %549 = vrot.lane.b32.xlu0 %v544_v14, %s1314_s10 }
  0xe6   : > { %344 = vrot.lane.b32.xlu1 %v1529_v13, %s1315_s11 }
  0xe9   : > { %656 = vrot.lane.b32.xlu0 %v544_v14, %s1316_s17 }
  0xea   : > { %368 = vrot.lane.b32.xlu1 %v1541_v15, %s1310_s23 }
  0xed   : > { %260 = vrot.lane.b32.xlu0 %v1529_v13, %s1311_s6 }
  0xee   : > { %383 = vrot.lane.b32.xlu1 %v1529_v13, %s1310_s23 }
  0xf1   : > { %327 = vrot.lane.b32.xlu0 %v1529_v13, %s1319_s22 }
  0xf2   : > { %439 = vrot.lane.b32.xlu1 %v1541_v15, %s1312_s7 }
  0xf5   : > { %404 = vrot.lane.b32.xlu0 %v1554_v16, %s1320_s26 }
  0xf6   : > { %454 = vrot.lane.b32.xlu1 %v1529_v13, %s1312_s7 }
  0xf9   : > { %470 = vrot.lane.b32.xlu0 %v1529_v13, %s1322_s28 }
  0xfa   : > { %487 = vrot.lane.b32.xlu1 %v1529_v13, %s1317_s19 }
  0xfd   : > { %545 = vrot.lane.b32.xlu0 %v542_v18, %s1314_s10 }
  0xfe   : > { %506 = vrot.lane.b32.xlu1 %v1541_v15, %s1314_s10 }
 0x101   : > { %652 = vrot.lane.b32.xlu0 %v542_v18, %s1316_s17 }
 0x102   : > { %521 = vrot.lane.b32.xlu1 %v1529_v13, %s1314_s10 }
 0x105   : > { %685 = vrot.lane.b32.xlu0 %v1529_v13, %s1323_s30 }
 0x106   : > { %566 = vrot.lane.b32.xlu1 %v561_v20, %s1318_s20 }
 0x109   : > { %289 = vrot.lane.b32.xlu0 %v284_v21, %s1324_s5 }
 0x10a   : > { %621 = vrot.lane.b32.xlu1 %v1541_v15, %s1316_s17 }
 0x10d   : > { %591 = vrot.lane.b32.xlu0 %v586_v23, %s1318_s20 }
 0x10e   : > { %636 = vrot.lane.b32.xlu1 %v1529_v13, %s1316_s17 }
 0x111   : > { %285 = vrot.lane.b32.xlu0 %v282_v26, %s1324_s5 }
 0x112   : > { %668 = vrot.lane.b32.xlu1 %v1529_v13, %s1321_s27 }
 0x115   : > { %306 = vrot.lane.b32.xlu0 %v1599_v28, %s1313_s8  ;;  %s1332_s8 = smov 63  }
 0x116   : > { %429 = vrot.lane.b32.xlu1 %v424_v30, %s1320_s26 }
 0x119   : > { %346 = vrot.lane.b32.xlu0 %v1599_v28, %s1315_s11  ;;  %s1334_s11 = smov 62  }
 0x11a   : > { %611 = vrot.lane.b32.xlu1 %v606_v33, %s1318_s20 }
 0x11d   : > { %385 = vrot.lane.b32.xlu0 %v1599_v28, %s1310_s23  ;;  %s1329_s23 = smov 78  }
 0x11e   : > { %262 = vrot.lane.b32.xlu1 %v1599_v28, %s1311_s6  ;;  %s1330_s6 = smov 76  }
 0x121   : > { %456 = vrot.lane.b32.xlu0 %v1599_v28, %s1312_s7  ;;  %s1331_s7 = smov 64  }
 0x122   : > { %329 = vrot.lane.b32.xlu1 %v1599_v28, %s1319_s22 }
 0x125   : > { %489 = vrot.lane.b32.xlu0 %v1599_v28, %s1317_s19 }
 0x126   : > { %406 = vrot.lane.b32.xlu1 %v1625_v34, %s1320_s26 }
 0x129   : > { %523 = vrot.lane.b32.xlu0 %v1599_v28, %s1314_s10 }
 0x12a   : > { %425 = vrot.lane.b32.xlu1 %v422_v36, %s1320_s26 }
 0x12b   : > { %v1635_v37 = vpop.permute.xlu0 %370 }
 0x12c   : > { %v1639_v40 = vpop.permute.xlu1 %264 }
 0x12d   : > { %568 = vrot.lane.b32.xlu0 %v565_v38, %s1318_s20 }
 0x12e   : > { %472 = vrot.lane.b32.xlu1 %v1599_v28, %s1322_s28  ;;  %s1119_s28 = sshll.u32 %s1382_s16, 8 }
 0x12f   : > { %v1642_v42 = vpop.permute.xlu0 %441 }
 0x130   : > { %v1646_v44 = vpop.permute.xlu1 %308 }
 0x131   : > { %587 = vrot.lane.b32.xlu0 %v584_v43, %s1318_s20 }
 0x132   : > { %547 = vrot.lane.b32.xlu1 %v543_v45, %s1314_s10  ;;  %s1333_s10 = smov 61  }
 0x133   : > { %v1649_v47 = vpop.permute.xlu0 %508 }
 0x134   : > { %v1652_v48 = vpop.permute.xlu1 %348 }
 0x135   : > { %638 = vrot.lane.b32.xlu0 %v1599_v28, %s1316_s17 }
 0x136   : > { %607 = vrot.lane.b32.xlu1 %v604_v49, %s1318_s20 }
 0x137   : > { %v1656_v50 = vpop.permute.xlu0 %623 }
 0x138   : > { %v1661_v52 = vpop.permute.xlu1 %387 }
 0x139   : > { %670 = vrot.lane.b32.xlu0 %v1599_v28, %s1321_s27  ;;  %s1106_s27 = sshll.u32 %s1466_s29, 4 }
 0x13a   : > { %654 = vrot.lane.b32.xlu1 %v543_v45, %s1316_s17  ;;  %s1335_s17 = smov 60  }
 0x13b   : > { %v1665_v53 = vpop.permute.xlu0 %366 }
 0x13c   : > { %v1668_v56 = vpop.permute.xlu1 %458 }
 0x13d   : > { %427 = vrot.lane.b32.xlu0 %v423_v54, %s1320_s26 }
 0x13e   : > { %687 = vrot.lane.b32.xlu1 %v1599_v28, %s1323_s30 }
 0x13f   : > { %v1673_v58 = vpop.permute.xlu0 %437 }
 0x140   : > { %v1677_v60 = vpop.permute.xlu1 %491 }
 0x141   : > { %609 = vrot.lane.b32.xlu0 %v605_v59, %s1318_s20 }
 0x142   : > { %287 = vrot.lane.b32.xlu1 %v1680_v61, %s1324_s5 }
 0x143   : > { %v1682_v63 = vpop.permute.xlu0 %504 }
 0x144   : > { %v1686_v0 = vpop.permute.xlu1 %525 }
 0x145   : > { %2294 = vst [vmem:[#allocation9_spill] sm:$0xff] %v1686_v0  ;;  %689 = vrot.lane.b32.xlu0 %v1479_v7, %s1323_s30  ;;  %s186_s30 = scalar_lea.vmem [#allocation6], %s1106_s27 }
 0x146   : > { %589 = vrot.lane.b32.xlu1 %v585_v1, %s1318_s20  ;;  %s1028_s5 = sshll.u32 %s186_s30, 4  ;;  %s2233_s5 = int_to_ptr.vmem [resolvable:$true] %s1028_s5 }
 0x147   : > { %v1690_v2 = vpop.permute.xlu0 %619  ;;  %s1239_s16 = scalar_lea.vmem %s2233_s5, 256 }
 0x148   : > { %v1693_v3 = vpop.permute.xlu1 %570  ;;  %p1240_p6 = scmp.ne.s32.totalorder %s2233_s5, %s1239_s16 }
 0x149   : > { %719 = vrot.lane.b32.xlu0 %v1529_v13, %s1327_s9 }
 0x14a   : > { %702 = vrot.lane.b32.xlu1 %v1497_v8, %s1327_s9  ;;  %p1241_p12 = pnand %p1240_p6, %p2311_p11 }
 0x14b   : > { %v1697_v4 = vpop.permute.xlu0 %331 }
 0x14c   : > { %v1701_v5 = vpop.permute.xlu1 %640  ;;  %p1242_p13 = pneg %p1241_p12 }
 0x14d   : > { %2295 = vst [vmem:[#allocation10_spill] sm:$0xff] %v1701_v5  ;;  %723 = vrot.lane.b32.xlu0 %v1479_v7, %s1327_s9 }
 0x14e   : > { %721 = vrot.lane.b32.xlu1 %v1599_v28, %s1327_s9 }
 0x14f   : > { %v1705_v9 = vpop.permute.xlu0 %408 }
 0x150   : > { %v1709_v11 = vpop.permute.xlu1 %672 }
 0x151   : > { %2296 = vst [vmem:[#allocation11_spill] sm:$0xff] %v1709_v11  ;;  %779 = vrot.lane.b32.xlu0 %v1599_v28, %s1328_s4 }
 0x152   : > { %777 = vrot.lane.b32.xlu1 %v1529_v13, %s1328_s4 }
 0x153   : > { %v1713_v12 = vpop.permute.xlu0 %474 }
 0x154   : > { %v1717_v14 = vpop.permute.xlu1 %304 }
 0x155   : > { %748 = vrot.lane.b32.xlu0 %v422_v36, %s1329_s23 }
 0x156   : > { %781 = vrot.lane.b32.xlu1 %v1479_v7, %s1328_s4 }
 0x157   : > { %v1720_v17 = vpop.permute.xlu0 %549 }
 0x158   : > { %v1724_v18 = vpop.permute.xlu1 %344 }
 0x159   : > { %752 = vrot.lane.b32.xlu0 %v424_v30, %s1329_s23 }
 0x15a   : > { %750 = vrot.lane.b32.xlu1 %v423_v54, %s1329_s23 }
 0x15b   : > { %v1729_v20 = vpop.permute.xlu0 %656 }
 0x15c   : > { %v1732_v22 = vpop.permute.xlu1 %368 }
 0x15d   : > { %795 = vrot.lane.b32.xlu0 %v1599_v28, %s1330_s6 }
 0x15e   : > { %793 = vrot.lane.b32.xlu1 %v1529_v13, %s1330_s6 }
 0x15f   : > { %v1735_v23 = vpop.permute.xlu0 %260 }
 0x160   : > { %v1738_v25 = vpop.permute.xlu1 %383 }
 0x161   : > { %810 = vrot.lane.b32.xlu0 %v1529_v13, %s1331_s7 }
 0x162   : > { %797 = vrot.lane.b32.xlu1 %v1479_v7, %s1330_s6  ;;  %s1014_s6 = scalar_lea.sflag [#allocation5], %s1466_s29 }
 0x163   : > { %v1741_v27 = vpop.permute.xlu0 %327 }
 0x164   : > { %v1744_v29 = vpop.permute.xlu1 %439 }
 0x165   : > { %814 = vrot.lane.b32.xlu0 %v1479_v7, %s1331_s7 }
 0x166   : > { %812 = vrot.lane.b32.xlu1 %v1599_v28, %s1331_s7  ;;  %s1340_s7 = smov [#allocation6]  }
 0x167   : > { %v1747_v30 = vpop.permute.xlu0 %404 }
 0x168   : > { %v1750_v31 = vpop.permute.xlu1 %454 }
 0x169   : > { %706 = vrot.lane.b32.xlu0 %v1476_v6, %s1327_s9 }
 0x16a   : > { %704 = vrot.lane.b32.xlu1 %v1541_v15, %s1327_s9 }
 0x16b   : > { %v1754_v33 = vpop.permute.xlu0 %470 }
 0x16c   : > { %v1758_v35 = vpop.permute.xlu1 %487 }
 0x16d   : > { %829 = vrot.lane.b32.xlu0 %v1599_v28, %s1332_s8 }
 0x16e   : > { %827 = vrot.lane.b32.xlu1 %v1529_v13, %s1332_s8 }
 0x16f   : > { %v1761_v36 = vpop.permute.xlu0 %545 }
 0x170   : > { %v1764_v38 = vpop.permute.xlu1 %506 }
 0x171   : > { %760 = vrot.lane.b32.xlu0 %v1497_v8, %s1328_s4 }
 0x172   : > { %831 = vrot.lane.b32.xlu1 %v1479_v7, %s1332_s8  ;;  %s1243_s8 = sshll.u32 %s1340_s7, 4  ;;  %s1244_s8 = int_to_ptr.vmem [resolvable:$false] %s1243_s8 }
 0x173   : > { %v1768_v39 = vpop.permute.xlu0 %652  ;;  %p1246_p7 = scmp.lt.s32.totalorder %s2233_s5, %s1244_s8 }
 0x174   : > { %v1771_v41 = vpop.permute.xlu1 %521 }
 0x175   : > { %764 = vrot.lane.b32.xlu0 %v1476_v6, %s1328_s4 }
 0x176   : > { %762 = vrot.lane.b32.xlu1 %v1541_v15, %s1328_s4 }
 0x177   : > { %v1775_v43 = vpop.permute.xlu0 %685 }
 0x178   : > { %2297 = vst [vmem:[#allocation12_spill] sm:$0xff] %v1775_v43  ;;  %v1779_v45 = vpop.permute.xlu1 %566 }
 0x179   : > { %859 = vrot.lane.b32.xlu0 %v1599_v28, %s1333_s10 }
 0x17a   : > { %857 = vrot.lane.b32.xlu1 %v1529_v13, %s1333_s10 }
 0x17b   : > { %v1782_v8 = vpop.permute.xlu0 %289 }
 0x17c   : > { %v1785_v46 = vpop.permute.xlu1 %621 }
 0x17d   : > { %735 = vrot.lane.b32.xlu0 %v1554_v16, %s1329_s23  ;;  %v1792_v6 = vsel %vm625_vm6, %v1690_v2, %v1785_v46  ;;  %v2280_v16 = vlaneseq }
 0x17e   : > { %861 = vrot.lane.b32.xlu1 %v1479_v7, %s1333_s10  ;;  %s1245_s10 = scalar_lea.vmem %s1244_s8, 512 }
 0x17f   : > { %v1794_v15 = vpop.permute.xlu0 %591  ;;  %v206_v57 = vand.u32 127, %v2280_v16  ;;  %p1247_p10 = scmp.lt.s32.totalorder %s1245_s10, %s1239_s16 }
 0x180   : > { %2298 = vst [vmem:[#allocation13_spill] sm:$0xff] %v1794_v15  ;;  %v1797_v49 = vpop.permute.xlu1 %636 }
 0x181   : > { %739 = vrot.lane.b32.xlu0 %v1520_v10, %s1329_s23  ;;  %v207_v24 = vadd.s32 128, %v206_v57  ;;  %v1838_v1 = vand.u32 15, %v206_v57  ;;  %v444_v57 = vsel %vm443_vm11, %v1673_v58, %v1744_v29  ;;  %p1248_p2 = por %p1247_p10, %p1246_p7 }
 0x182   : > { %737 = vrot.lane.b32.xlu1 %v1625_v34, %s1329_s23  ;;  %s2231_s23 = scalar_lea.hbm %s2278_s3, %s1119_s28 }
 0x183   : > { %v1801_v51 = vpop.permute.xlu0 %285  ;;  %vm252_vm12 = vcmp.ge.s32.totalorder %v1838_v1, 1  ;;  %vm298_vm14 = vcmp.lt.s32.totalorder %v1838_v1, 15  ;;  %p1249_p4 = pnand %p1248_p2, %p1242_p13 }
 0x184   : > { %v1805_v54 = vpop.permute.xlu1 %668 }
 0x185   : > { %846 = vrot.lane.b32.xlu0 %v1680_v61, %s1334_s11 }
 0x186   : > { %844 = vrot.lane.b32.xlu1 %v282_v26, %s1334_s11 }
 0x187   : > { %v1808_v55 = vpop.permute.xlu0 %306 }
 0x188   : > { %v1816_v10 = vsel %vm310_vm7, %v1717_v14, %v1808_v55  ;;  %v1818_v34 = vpop.permute.xlu1 %429 }
 0x189   : > { %874 = vrot.lane.b32.xlu0 %v1529_v13, %s1335_s17 }
 0x18a   : > { %848 = vrot.lane.b32.xlu1 %v284_v21, %s1334_s11  ;;  %v1843_v21 = vand.u32 15, %v207_v24 }
 0x18b   : > { %v1821_v59 = vpop.permute.xlu0 %346 }
 0x18c   : > { %v1828_v26 = vsel %vm350_vm8, %v1724_v18, %v1821_v59  ;;  %v1830_v61 = vpop.permute.xlu1 %611  ;;  %vm253_vm13 = vcmp.ge.s32.totalorder %v1843_v21, 1  ;;  %v373_v18 = vsel %vm372_vm9, %v1665_v53, %v1732_v22  ;;  %vm299_vm1 = vcmp.lt.s32.totalorder %v1843_v21, 15 }
 0x18d   : > { %878 = vrot.lane.b32.xlu0 %v1479_v7, %s1335_s17  ;;  %v1336_v53 = vmov 4  }
 0x18e   : > { %876 = vrot.lane.b32.xlu1 %v1599_v28, %s1335_s17 }
 0x18f   : > { %v1840_v19 = vpop.permute.xlu0 %385 }
 0x190   : > { %v1848_v7 = vsel %vm372_vm9, %v1738_v25, %v1840_v19  ;;  %v1852_v2 = vpop.permute.xlu1 %262  ;;  %v374_v25 = vsel %vm372_vm9, %v1732_v22, %v1635_v37  ;;  %v445_v37 = vsel %vm443_vm11, %v1744_v29, %v1642_v42  ;;  %v377_v22 = vsel %vm252_vm12, %v373_v18, 0.0 }
 0x191   : > { %914 = vperm.xlu0 %1199, %v1836_v62   ;;  %v1859_v14 = vsel %vm266_vm10, %v1735_v23, %v1852_v2  ;;  %v378_v16 = vsel %vm253_vm13, %v374_v25, 0.0  ;;  %v511_v42 = vsel %vm510_vm0, %v1682_v63, %v1764_v38  ;;  %v512_v29 = vsel %vm510_vm0, %v1764_v38, %v1649_v47 }
 0x192   : > { %898 = vperm.xlu1 %1198, %v1836_v62   ;;  %v1337_v25 = vmov 2   ;;  %v379_v63 = vmul.f32 -0.25, %v377_v22  ;;  %v515_v47 = vsel %vm252_vm12, %v511_v42, 0.0  ;;  %v516_v38 = vsel %vm253_vm13, %v512_v29, 0.0 }
 0x193   : > { %v1870_v24 = vpop.permute.xlu0 %456 }
 0x194   : > { %v1876_v23 = vsel %vm443_vm11, %v1750_v31, %v1870_v24  ;;  %v1882_v58 = vpop.permute.xlu1 %329  ;;  %v448_v31 = vsel %vm298_vm14, %v444_v57, 0.0  ;;  %v449_v57 = vsel %vm299_vm1, %v445_v37, 0.0 }
 0x195   : > { %1202 = vset.pattern.permute.xlu0 %v1336_v53  ;;  %v1893_v32 = vsel %vm333_vm15, %v1741_v27, %v1882_v58  ;;  %v380_v53 = vmul.f32 -0.25, %v378_v16  ;;  %v450_v15 = vmul.f32 -0.25, %v448_v31  ;;  %v451_v11 = vmul.f32 -0.25, %v449_v57 }
 0x196   : > { %970 = vperm.xlu0 %1202, %v1836_v62   ;;  %1200 = vset.pattern.permute.xlu1 %v1337_v25  ;;  %v627_v16 = vsel %vm625_vm6, %v1785_v46, %v1656_v50  ;;  %v630_v50 = vsel %vm298_vm14, %v1792_v6, 0.0 }
 0x197   : > { %v1902_v18 = vpop.permute.xlu0 %489  ;;  %934 = vperm.xlu1 %1200, %v1836_v62   ;;  %v631_v46 = vsel %vm299_vm1, %v627_v16, 0.0 }
 0x198   : > { %v1909_v27 = vsel %vm2284_vm2, %v1758_v35, %v1902_v18  ;;  %v407_v43 = vpop.permute.xlu1 %406  ;;  %v2299_v35 = vmov 0   ;;  %vm234_vm2 = vcmp.ge.s32.totalorder %v1843_v21, 2 }
 0x199   : > { %v411_v37 = vsel %vm2283_vm3, %v1747_v30, %v407_v43  ;;  %v412_v25 = vsel %vm2283_vm3, %v407_v43, %v1705_v9  ;;  %v1338_v30 = vmov 3   ;;  %v517_v9 = vmul.f32 0.5, %v515_v47 }
 0x19a   : > { %1205 = vset.pattern.permute.xlu0 %v2299_v35  ;;  %v415_v22 = vadd.f32 %v411_v37, %v379_v63  ;;  %v416_v31 = vadd.f32 %v412_v25, %v380_v53  ;;  %v518_v43 = vmul.f32 0.5, %v516_v38  ;;  %v633_v38 = vmul.f32 0.5, %v631_v46 }
 0x19b   : > { %v1924_v5 = vpop.permute.xlu0 %523  ;;  %1201 = vset.pattern.permute.xlu1 %v1338_v30  ;;  %v1001_v30 = vld [vmem:[%s2277_s2] sm:$0xff]  ;;  %vm233_vm3 = vcmp.ge.s32.totalorder %v1838_v1, 2  ;;  %v246_v46 = vsel %vm234_vm2, %v1599_v28, 0.0 }
 0x19c   : > { %v1929_v42 = vsel %vm510_vm0, %v1771_v41, %v1924_v5  ;;  %v452_v29 = vadd.f32 %v450_v15, %v415_v22  ;;  %v453_v57 = vadd.f32 %v451_v11, %v416_v31  ;;  %950 = vperm.xlu1 %1201, %v1836_v62   ;;  %v1932_v0 = vpop.permute.xlu1 %425  ;;  %v632_v15 = vmul.f32 0.5, %v630_v50 }
 0x19d   : > { %v1339_v22 = vmov 5   ;;  %v245_v50 = vsel %vm233_vm3, %v1529_v13, 0.0 }
 0x19e   : > { %v519_v63 = vadd.f32 %v517_v9, %v452_v29  ;;  %v520_v53 = vadd.f32 %v518_v43, %v453_v57 }
 0x19f   : > { %v569_v41 = vpop.permute.xlu0 %568 }
 0x1a0   : > { %v573_v47 = vsel %vm572_vm4, %v1779_v45, %v569_v41  ;;  %v574_v11 = vsel %vm572_vm4, %v569_v41, %v1693_v3  ;;  %1203 = vset.pattern.permute.xlu1 %v1339_v22  ;;  %v1943_v6 = vpop.permute.xlu1 %472 }
 0x1a1   : > { %v577_v37 = vadd.f32 %v573_v47, %v519_v63  ;;  %v578_v25 = vadd.f32 %v574_v11, %v520_v53  ;;  %v1948_v16 = vsel %vm2285_vm5, %v1754_v33, %v1943_v6  ;;  %986 = vperm.xlu1 %1203, %v1836_v62   ;;  %vm2286_vm5 = vcmask 752640  }
 0x1a2   : > { %v247_v63 = vmul.f32 -0.083333336, %v245_v50 }
 0x1a3   : > { %v1951_v31 = vadd.f32 %v632_v15, %v577_v37  ;;  %v1953_v45 = vadd.f32 %v633_v38, %v578_v25  ;;  %v1955_v3 = vpop.permute.xlu0 %587  ;;  %v355_v37 = vsel %vm233_vm3, %v1828_v26, 0.0 }
 0x1a4   : > { %v548_v9 = vpop.permute.xlu1 %547 }
 0x1a5   : > { %v551_v43 = vsel %vm510_vm0, %v1761_v36, %v548_v9  ;;  %1204 = vset.pattern.permute.xlu1 %v2299_v35  ;;  %v268_v36 = vsel %vm266_vm10, %v1852_v2, %v1639_v40  ;;  %v312_v35 = vsel %vm310_vm7, %v1808_v55, %v1646_v44  ;;  %v271_v40 = vsel %vm252_vm12, %v1859_v14, 0.0 }
 0x1a6   : > { %1004 = vperm.xlu1 %1204, %v1001_v30   ;;  %v272_v44 = vsel %vm253_vm13, %v268_v36, 0.0  ;;  %v552_v55 = vsel %vm510_vm0, %v548_v9, %v1720_v17  ;;  %v315_v2 = vsel %vm298_vm14, %v1816_v10, 0.0  ;;  %v316_v13 = vsel %vm299_vm1, %v312_v35, 0.0 }
 0x1a7   : > { %v1963_v33 = vpop.permute.xlu0 %638  ;;  %vm321_vm7 = vcmp.lt.s32.totalorder %v1838_v1, 14  ;;  %v248_v17 = vmul.f32 -0.083333336, %v246_v46  ;;  %v273_v53 = vmul.f32 0.16666667, %v271_v40  ;;  %v555_v10 = vsel %vm252_vm12, %v551_v43, 0.0 }
 0x1a8   : > { %v1968_v62 = vsel %vm625_vm6, %v1797_v49, %v1963_v33  ;;  %v608_v29 = vpop.permute.xlu1 %607  ;;  %v274_v47 = vmul.f32 0.16666667, %v272_v44  ;;  %v556_v11 = vsel %vm253_vm13, %v552_v55, 0.0  ;;  %v317_v15 = vmul.f32 0.16666667, %v315_v2 }
 0x1a9   : > { %v318_v38 = vmul.f32 0.16666667, %v316_v13  ;;  %vm322_vm10 = vcmp.lt.s32.totalorder %v1843_v21, 14  ;;  %v390_v30 = vsel %vm372_vm9, %v1840_v19, %v1661_v52  ;;  %v335_v9 = vsel %vm333_vm15, %v1882_v58, %v1697_v4 }
 0x1aa   : > { %v557_v43 = vmul.f32 0.5, %v555_v10  ;;  %v275_v35 = vadd.f32 %v273_v53, %v247_v63  ;;  %v276_v50 = vadd.f32 %v274_v47, %v248_v17  ;;  %v338_v52 = vsel %vm321_vm7, %v1893_v32, 0.0 }
 0x1ab   : > { %v1978_v57 = vpop.permute.xlu0 %670  ;;  %v339_v4 = vsel %vm322_vm10, %v335_v9, 0.0  ;;  %v357_v10 = vmul.f32 0.16666667, %v355_v37  ;;  %vm2301_vm9 = vcmask 785408  }
 0x1ac   : > { %v1983_v49 = vsel %vm2286_vm5, %v1805_v54, %v1978_v57  ;;  %v655_v54 = vpop.permute.xlu1 %654  ;;  %vm291_vm5 = vcmask 1031168   ;;  %v341_v63 = vmul.f32 -0.083333336, %v339_v4 }
 0x1ad   : > { %v658_v28 = vsel %vm625_vm6, %v1768_v39, %v655_v54  ;;  %v659_v14 = vsel %vm625_vm6, %v655_v54, %v1729_v20  ;;  %v352_v20 = vsel %vm350_vm8, %v1821_v59, %v1652_v48  ;;  %v558_v48 = vmul.f32 0.5, %v556_v11 }
 0x1ae   : > { %v662_v25 = vsel %vm298_vm14, %v658_v28, 0.0  ;;  %v663_v22 = vsel %vm299_vm1, %v659_v14, 0.0  ;;  %v356_v32 = vsel %vm234_vm2, %v352_v20, 0.0  ;;  %v393_v14 = vsel %vm252_vm12, %v1848_v7, 0.0 }
 0x1af   : > { %v2008_v41 = vpop.permute.xlu0 %427  ;;  %v664_v46 = vmul.f32 0.5, %v662_v25  ;;  %v665_v40 = vmul.f32 0.5, %v663_v22  ;;  %v394_v11 = vsel %vm253_vm13, %v390_v30, 0.0  ;;  %v358_v25 = vmul.f32 0.16666667, %v356_v32 }
 0x1b0   : > { %v2015_v39 = vpop.permute.xlu1 %687  ;;  %v464_v20 = vsel %vm298_vm14, %v1876_v23, 0.0  ;;  %vm2300_vm8 = vcmask 883712   ;;  %v495_v23 = vsel %vm2301_vm9, %v1902_v18, %v1677_v60  ;;  %v498_v60 = vsel %vm233_vm3, %v1909_v27, 0.0  ;;  %v2304_v18 = vld [vmem:[#allocation9_spill] sm:$0xff] }
 0x1b1   : > { %vm799_vm9 = vcmask 621568  }
 0x1b3   : > { %v610_v59 = vpop.permute.xlu0 %609 }
 0x1b4   : > { %v613_v36 = vsel %vm572_vm4, %v608_v29, %v610_v59  ;;  %v614_v26 = vsel %vm572_vm4, %v610_v59, %v1830_v61  ;;  %v288_v54 = vpop.permute.xlu1 %287 }
 0x1b5   : > { %v617_v44 = vadd.f32 %v613_v36, %v557_v43  ;;  %v618_v55 = vadd.f32 %v614_v26, %v558_v48  ;;  %v292_v19 = vsel %vm291_vm5, %v1801_v51, %v288_v54  ;;  %v293_v61 = vsel %vm291_vm5, %v288_v54, %v1782_v8 }
 0x1b6   : > { %v296_v2 = vadd.f32 %v292_v19, %v275_v35  ;;  %v297_v13 = vadd.f32 %v293_v61, %v276_v50  ;;  %v461_v51 = vsel %vm443_vm11, %v1870_v24, %v1668_v56  ;;  %v340_v8 = vmul.f32 -0.083333336, %v338_v52 }
 0x1b7   : > { %v2045_v58 = vadd.f32 %v664_v46, %v617_v44  ;;  %v2047_v29 = vadd.f32 %v665_v40, %v618_v55  ;;  %v2049_v28 = vpop.permute.xlu0 %689  ;;  %v395_v43 = vmul.f32 -0.5, %v393_v14  ;;  %v465_v56 = vsel %vm299_vm1, %v461_v51, 0.0 }
 0x1b8   : > { %v319_v17 = vadd.f32 %v317_v15, %v296_v2  ;;  %v320_v53 = vadd.f32 %v318_v38, %v297_v13  ;;  %v590_v47 = vpop.permute.xlu1 %589  ;;  %v396_v24 = vmul.f32 -0.5, %v394_v11  ;;  %v478_v15 = vsel %vm2300_vm8, %v1943_v6, %v1713_v12  ;;  %v2305_v2 = vld [vmem:[#allocation10_spill] sm:$0xff] }
 0x1b9   : > { %v466_v48 = vmul.f32 -0.5, %v464_v20  ;;  %v467_v59 = vmul.f32 -0.5, %v465_v56  ;;  %v481_v50 = vsel %vm321_vm7, %v1948_v16, 0.0  ;;  %v482_v12 = vsel %vm322_vm10, %v478_v15, 0.0  ;;  %v2308_v20 = vld [vmem:[#allocation12_spill] sm:$0xff]  ;;  %v2309_v15 = vld [vmem:[#allocation13_spill] sm:$0xff] }
 0x1ba   : > { %v342_v22 = vadd.f32 %v340_v8, %v319_v17  ;;  %v343_v7 = vadd.f32 %v341_v63, %v320_v53  ;;  %vm2302_vm11 = vcmask 900096   ;;  %v528_v40 = vsel %vm510_vm0, %v1924_v5, %v2304_v18  ;;  %v2306_v63 = vld [vmem:[#allocation11_spill] sm:$0xff] }
 0x1bb   : > { %v2064_v9 = vpop.permute.xlu0 %719  ;;  %v431_v6 = vsel %vm2302_vm11, %v1932_v0, %v2008_v41  ;;  %vm2303_vm15 = vmmov %vm2302_vm11  ;;  %v499_v54 = vsel %vm234_vm2, %v495_v23, 0.0  ;;  %v531_v0 = vsel %vm252_vm12, %v1929_v42, 0.0  ;;  %v500_v19 = vmul.f32 -0.16666667, %v498_v60 }
 0x1bc   : > { %v359_v38 = vadd.f32 %v357_v10, %v342_v22  ;;  %v360_v37 = vadd.f32 %v358_v25, %v343_v7  ;;  %v2071_v30 = vpop.permute.xlu1 %702  ;;  %v432_v46 = vsel %vm2303_vm15, %v2008_v41, %v1818_v34  ;;  %v483_v34 = vmul.f32 0.16666667, %v481_v50 }
 0x1bd   : > { %v484_v41 = vmul.f32 0.16666667, %v482_v12  ;;  %v532_v5 = vsel %vm253_vm13, %v528_v40, 0.0  ;;  %v501_v61 = vmul.f32 -0.16666667, %v499_v54  ;;  %v643_v13 = vsel %vm625_vm6, %v1963_v33, %v2305_v2 }
 0x1be   : > { %v397_v36 = vadd.f32 %v395_v43, %v359_v38  ;;  %v398_v26 = vadd.f32 %v396_v24, %v360_v37  ;;  %v533_v42 = vmul.f32 0.6666667, %v531_v0  ;;  %vm691_vm0 = vcmask 654336  }
 0x1bf   : > { %v2076_v35 = vpop.permute.xlu0 %723  ;;  %v534_v8 = vmul.f32 0.6666667, %v532_v5  ;;  %vm2307_vm5 = vcmask 752640   ;;  %v646_v25 = vsel %vm298_vm14, %v1968_v62, 0.0  ;;  %v647_v33 = vsel %vm299_vm1, %v643_v13, 0.0 }
 0x1c0   : > { %v435_v16 = vadd.f32 %v431_v6, %v397_v36  ;;  %v436_v44 = vadd.f32 %v432_v46, %v398_v26  ;;  %v2095_v55 = vpop.permute.xlu1 %721  ;;  %v676_v17 = vsel %vm2307_vm5, %v1978_v57, %v2306_v63  ;;  %v692_v22 = vsel %vm691_vm0, %v2308_v20, %v2015_v39 }
 0x1c1   : > { %v679_v57 = vsel %vm321_vm7, %v1983_v49, 0.0  ;;  %v680_v24 = vsel %vm322_vm10, %v676_v17, 0.0  ;;  %v593_v62 = vsel %vm572_vm4, %v1955_v3, %v590_v47  ;;  %v594_v38 = vsel %vm572_vm4, %v590_v47, %v2309_v15 }
 0x1c2   : > { %v468_v52 = vadd.f32 %v466_v48, %v435_v16  ;;  %v469_v4 = vadd.f32 %v467_v59, %v436_v44  ;;  %v648_v37 = vmul.f32 0.6666667, %v646_v25  ;;  %v649_v48 = vmul.f32 0.6666667, %v647_v33 }
 0x1c3   : > { %v2102_v27 = vpop.permute.xlu0 %779  ;;  %v696_v26 = vsel %vm233_vm3, %v692_v22, 0.0  ;;  %v681_v50 = vmul.f32 -0.16666667, %v679_v57  ;;  %v682_v12 = vmul.f32 -0.16666667, %v680_v24  ;;  %vm708_vm6 = vcmask 646144  }
 0x1c4   : > { %v485_v32 = vadd.f32 %v483_v34, %v468_v52  ;;  %v486_v14 = vadd.f32 %v484_v41, %v469_v4  ;;  %v2109_v51 = vpop.permute.xlu1 %777  ;;  %v698_v60 = vmul.f32 0.16666667, %v696_v26  ;;  %v693_v2 = vsel %vm691_vm0, %v2015_v39, %v2049_v28 }
 0x1c5   : > { %vm766_vm4 = vcmask 629760   ;;  %vm741_vm8 = vcmask 637952   ;;  %vm816_vm11 = vcmask 523264   ;;  %vm833_vm15 = vcmask 515072  }
 0x1c6   : > { %v502_v53 = vadd.f32 %v500_v19, %v485_v32  ;;  %v503_v10 = vadd.f32 %v501_v61, %v486_v14  ;;  %v725_v32 = vsel %vm708_vm6, %v2064_v9, %v2095_v55  ;;  %vm880_vm0 = vcmask 490496  }
 0x1c7   : > { %v2114_v11 = vpop.permute.xlu0 %748  ;;  %v729_v39 = vsel %vm252_vm12, %v725_v32, 0.0 }
 0x1c8   : > { %v535_v7 = vadd.f32 %v533_v42, %v502_v53  ;;  %v536_v43 = vadd.f32 %v534_v8, %v503_v10  ;;  %v782_v56 = vpop.permute.xlu1 %781  ;;  %v697_v42 = vsel %vm234_vm2, %v693_v2, 0.0  ;;  %v726_v8 = vsel %vm708_vm6, %v2095_v55, %v2076_v35 }
 0x1c9   : > { %v699_v28 = vmul.f32 0.16666667, %v697_v42  ;;  %v730_v9 = vsel %vm253_vm13, %v726_v8, 0.0  ;;  %v731_v53 = vmul.f32 -0.5, %v729_v39  ;;  %v783_v35 = vsel %vm766_vm4, %v2109_v51, %v2102_v27 }
 0x1ca   : > { %v597_v59 = vadd.f32 %v593_v62, %v535_v7  ;;  %v598_v23 = vadd.f32 %v594_v38, %v536_v43  ;;  %v732_v33 = vmul.f32 -0.5, %v730_v9  ;;  %v784_v22 = vsel %vm766_vm4, %v2102_v27, %v782_v56 }
 0x1cb   : > { %v753_v36 = vpop.permute.xlu0 %752  ;;  %v787_v57 = vsel %vm298_vm14, %v783_v35, 0.0  ;;  %v788_v51 = vsel %vm299_vm1, %v784_v22, 0.0 }
 0x1cc   : > { %v650_v49 = vadd.f32 %v648_v37, %v597_v59  ;;  %v651_v6 = vadd.f32 %v649_v48, %v598_v23  ;;  %v751_v46 = vpop.permute.xlu1 %750  ;;  %v789_v27 = vmul.f32 -0.5, %v787_v57 }
 0x1cd   : > { %v754_v24 = vsel %vm741_vm8, %v2114_v11, %v751_v46  ;;  %v755_v37 = vsel %vm741_vm8, %v751_v46, %v753_v36 }
 0x1ce   : > { %v683_v18 = vadd.f32 %v681_v50, %v650_v49  ;;  %v684_v40 = vadd.f32 %v682_v12, %v651_v6  ;;  %v790_v49 = vmul.f32 -0.5, %v788_v51 }
 0x1cf   : > { %v796_v3 = vpop.permute.xlu0 %795 }
 0x1d0   : > { %v700_v16 = vadd.f32 %v698_v60, %v683_v18  ;;  %v794_v44 = vpop.permute.xlu1 %793  ;;  %v701_v10 = vadd.f32 %v699_v28, %v684_v40 }
 0x1d1   : > { %v800_v48 = vsel %vm799_vm9, %v794_v44, %v796_v3 }
 0x1d2   : > { %v733_v55 = vadd.f32 %v731_v53, %v700_v16  ;;  %v734_v7 = vadd.f32 %v732_v33, %v701_v10  ;;  %v804_v36 = vsel %vm321_vm7, %v800_v48, 0.0 }
 0x1d3   : > { %v811_v47 = vpop.permute.xlu0 %810 }
 0x1d4   : > { %v798_v54 = vpop.permute.xlu1 %797  ;;  %v758_v62 = vadd.f32 %v754_v24, %v733_v55  ;;  %v759_v56 = vadd.f32 %v755_v37, %v734_v7 }
 0x1d5   : > { %v801_v15 = vsel %vm799_vm9, %v796_v3, %v798_v54  ;;  %v806_v54 = vmul.f32 0.16666667, %v804_v36 }
 0x1d6   : > { %v805_v50 = vsel %vm322_vm10, %v801_v15, 0.0  ;;  %v791_v6 = vadd.f32 %v789_v27, %v758_v62  ;;  %v792_v16 = vadd.f32 %v790_v49, %v759_v56 }
 0x1d7   : > { %v815_v0 = vpop.permute.xlu0 %814 }
 0x1d8   : > { %v813_v34 = vpop.permute.xlu1 %812  ;;  %v808_v32 = vadd.f32 %v806_v54, %v791_v6  ;;  %v2310_v6 = vlaneseq }
 0x1d9   : > { %v817_v59 = vsel %vm816_vm11, %v811_v47, %v813_v34  ;;  %v818_v23 = vsel %vm816_vm11, %v813_v34, %v815_v0 }
 0x1da   : > { %v821_v60 = vsel %vm233_vm3, %v817_v59, 0.0  ;;  %v822_v18 = vsel %vm234_vm2, %v818_v23, 0.0  ;;  %vm863_vm2 = vcmask 498688   ;;  %vm850_vm3 = vcmask 506880  }
 0x1db   : > { %v707_v41 = vpop.permute.xlu0 %706  ;;  %v823_v0 = vmul.f32 -0.083333336, %v821_v60  ;;  %v824_v34 = vmul.f32 -0.083333336, %v822_v18  ;;  %v902_v36 = vshrl.u32 %v2310_v6, 7 }
 0x1dc   : > { %v705_v52 = vpop.permute.xlu1 %704 }
 0x1dd   : > { %v709_v11 = vsel %vm708_vm6, %v2071_v30, %v705_v52  ;;  %v710_v12 = vsel %vm708_vm6, %v705_v52, %v707_v41  ;;  %v807_v30 = vmul.f32 0.16666667, %v805_v50  ;;  %v825_v28 = vadd.f32 %v823_v0, %v808_v32 }
 0x1de   : > { %v713_v44 = vsel %vm252_vm12, %v709_v11, 0.0  ;;  %v714_v47 = vsel %vm253_vm13, %v710_v12, 0.0  ;;  %v903_v21 = vsub.s32 0, %v902_v36 }
 0x1df   : > { %v830_v4 = vpop.permute.xlu0 %829  ;;  %v809_v42 = vadd.f32 %v807_v30, %v792_v16  ;;  %v919_v16 = vsub.s32 1, %v902_v36 }
 0x1e0   : > { %v828_v19 = vpop.permute.xlu1 %827 }
 0x1e1   : > { %v834_v40 = vsel %vm833_vm15, %v828_v19, %v830_v4  ;;  %v826_v9 = vadd.f32 %v824_v34, %v809_v42 }
 0x1e2   : > { %v838_v41 = vsel %vm252_vm12, %v834_v40, 0.0 }
 0x1e3   : > { %v2135_v5 = vpop.permute.xlu0 %760  ;;  %v840_v8 = vmul.f32 0.16666667, %v838_v41 }
 0x1e4   : > { %v832_v61 = vpop.permute.xlu1 %831 }
 0x1e5   : > { %v835_v3 = vsel %vm833_vm15, %v830_v4, %v832_v61  ;;  %v715_v4 = vmul.f32 -0.25, %v713_v44  ;;  %v716_v61 = vmul.f32 -0.25, %v714_v47 }
 0x1e6   : > { %v839_v52 = vsel %vm253_vm13, %v835_v3, 0.0 }
 0x1e7   : > { %v2140_v13 = vpop.permute.xlu0 %764  ;;  %v841_v39 = vmul.f32 0.16666667, %v839_v52  ;;  %v717_v35 = vadd.f32 %v715_v4, %v1951_v31  ;;  %v718_v55 = vadd.f32 %v716_v61, %v1953_v45 }
 0x1e8   : > { %v2145_v14 = vpop.permute.xlu1 %762 }
 0x1e9   : > { %v767_v10 = vsel %vm766_vm4, %v2135_v5, %v2145_v14  ;;  %v768_v33 = vsel %vm766_vm4, %v2145_v14, %v2140_v13  ;;  %v842_v5 = vadd.f32 %v840_v8, %v825_v28  ;;  %v843_v15 = vadd.f32 %v841_v39, %v826_v9 }
 0x1ea   : > { %v771_v31 = vsel %vm298_vm14, %v767_v10, 0.0  ;;  %v772_v45 = vsel %vm299_vm1, %v768_v33, 0.0  ;;  %v1111_v10 = vclamps-f32 %v2045_v58, 3.0  ;;  %v1112_v33 = vclamps-f32 %v2047_v29, 3.0 }
 0x1eb   : > { %v2152_v63 = vpop.permute.xlu0 %859  ;;  %v773_v48 = vmul.f32 -0.25, %v771_v31  ;;  %v774_v27 = vmul.f32 -0.25, %v772_v45 }
 0x1ec   : > { %v2156_v17 = vpop.permute.xlu1 %857  ;;  %v996_v58 = vrot.slane %v1112_v33, %v919_v16 }
 0x1ed   : > { %v864_v22 = vsel %vm863_vm2, %v2156_v17, %v2152_v63 }
 0x1ef   : > { %v2160_v25 = vpop.permute.xlu0 %735 }
 0x1f0   : > { %v862_v20 = vpop.permute.xlu1 %861 }
 0x1f1   : > { %v865_v7 = vsel %vm863_vm2, %v2152_v63, %v862_v20  ;;  %v868_v63 = vsel %vm298_vm14, %v864_v22, 0.0 }
 0x1f2   : > { %v869_v17 = vsel %vm299_vm1, %v865_v7, 0.0  ;;  %v870_v23 = vmul.f32 0.16666667, %v868_v63 }
 0x1f3   : > { %v740_v43 = vpop.permute.xlu0 %739 }
 0x1f4   : > { %v738_v38 = vpop.permute.xlu1 %737 }
 0x1f5   : > { %v742_v57 = vsel %vm741_vm8, %v2160_v25, %v738_v38  ;;  %v743_v24 = vsel %vm741_vm8, %v738_v38, %v740_v43 }
 0x1f6   : > { %v746_v25 = vadd.f32 %v742_v57, %v717_v35  ;;  %v747_v20 = vadd.f32 %v743_v24, %v718_v55 }
 0x1f7   : > { %v847_v26 = vpop.permute.xlu0 %846 }
 0x1f8   : > { %v845_v46 = vpop.permute.xlu1 %844  ;;  %v775_v50 = vadd.f32 %v773_v48, %v746_v25  ;;  %v776_v11 = vadd.f32 %v774_v27, %v747_v20 }
 0x1f9   : > { %v851_v13 = vsel %vm850_vm3, %v845_v46, %v847_v26 }
 0x1fa   : > { %v855_v56 = vadd.f32 %v851_v13, %v842_v5  ;;  %v1107_v18 = vclamps-f32 %v775_v50, 3.0  ;;  %v1108_v1 = vclamps-f32 %v776_v11, 3.0  ;;  %v980_v5 = vrot.slane %v1112_v33, %v903_v21 }
 0x1fb   : > { %v875_v19 = vpop.permute.xlu0 %874 }
 0x1fc   : > { %v849_v2 = vpop.permute.xlu1 %848  ;;  %v872_v46 = vadd.f32 %v870_v23, %v855_v56  ;;  %v904_v47 = vrot.slane %v1107_v18, %v903_v21  ;;  %v908_v54 = vrot.slane %v1108_v1, %v903_v21  ;;  %v920_v41 = vrot.slane %v1107_v18, %v919_v16 }
 0x1fd   : > { %v852_v14 = vsel %vm850_vm3, %v847_v26, %v849_v2  ;;  %v871_v26 = vmul.f32 0.16666667, %v869_v17  ;;  %v924_v52 = vrot.slane %v1108_v1, %v919_v16 }
 0x1fe   : > { %v856_v59 = vadd.f32 %v852_v14, %v843_v15  ;;  %v992_v14 = vrot.slane %v1111_v10, %v919_v16 }
 0x1ff   : > { %v879_v62 = vpop.permute.xlu0 %878 }
 0x200   : > { %v877_v53 = vpop.permute.xlu1 %876  ;;  %v873_v60 = vadd.f32 %v871_v26, %v856_v59 }
 0x201   : > { %v881_v51 = vsel %vm880_vm0, %v875_v19, %v877_v53  ;;  %v882_v37 = vsel %vm880_vm0, %v877_v53, %v879_v62  ;;  %v976_v62 = vrot.slane %v1111_v10, %v903_v21 }
 0x202   : > { %v885_v43 = vsel %vm321_vm7, %v881_v51, 0.0  ;;  %v886_v38 = vsel %vm322_vm10, %v882_v37, 0.0 }
 0x203   : > { %v887_v12 = vmul.f32 -0.083333336, %v885_v43  ;;  %v888_v49 = vmul.f32 -0.083333336, %v886_v38 }
 0x205   : > { %v889_v40 = vadd.f32 %v887_v12, %v872_v46  ;;  %v890_v3 = vadd.f32 %v888_v49, %v873_v60 }
 0x207   : > { %v1109_v30 = vclamps-f32 %v889_v40, 3.0  ;;  %v1110_v44 = vclamps-f32 %v890_v3, 3.0 }
 0x209   : > { %v940_v32 = vrot.slane %v1109_v30, %v903_v21  ;;  %v944_v42 = vrot.slane %v1110_v44, %v903_v21  ;;  %v956_v22 = vrot.slane %v1109_v30, %v919_v16  ;;  %v960_v7 = vrot.slane %v1110_v44, %v919_v16 }
 0x210   : > { %v915_v34 = vpop.permute.xlu0 %914 }
 0x211   : > { %v899_v0 = vpop.permute.xlu1 %898  ;;  %v925_v4 = vmul.f32 %v920_v41, %v915_v34  ;;  %v926_v61 = vmul.f32 %v924_v52, %v915_v34 }
 0x212   : > { %v909_v19 = vmul.f32 %v904_v47, %v899_v0  ;;  %v910_v2 = vmul.f32 %v908_v54, %v899_v0 }
 0x214   : > { %v927_v39 = vadd.f32 %v925_v4, %v909_v19  ;;  %v928_v28 = vadd.f32 %v926_v61, %v910_v2 }
 0x215   : > { %v971_v57 = vpop.permute.xlu0 %970 }
 0x216   : > { %v935_v8 = vpop.permute.xlu1 %934  ;;  %v981_v37 = vmul.f32 %v976_v62, %v971_v57  ;;  %v982_v31 = vmul.f32 %v980_v5, %v971_v57 }
 0x217   : > { %v945_v9 = vmul.f32 %v940_v32, %v935_v8  ;;  %v946_v53 = vmul.f32 %v944_v42, %v935_v8 }
 0x219   : > { %v947_v35 = vadd.f32 %v945_v9, %v927_v39  ;;  %v948_v55 = vadd.f32 %v946_v53, %v928_v28 }
 0x21b   : > { %v951_v24 = vpop.permute.xlu1 %950 }
 0x21c   : > { %v961_v15 = vmul.f32 %v956_v22, %v951_v24  ;;  %v962_v51 = vmul.f32 %v960_v7, %v951_v24 }
 0x21e   : > { %v963_v45 = vadd.f32 %v961_v15, %v947_v35  ;;  %v964_v13 = vadd.f32 %v962_v51, %v948_v55 }
 0x220   : > { %v987_v29 = vpop.permute.xlu1 %986  ;;  %v983_v63 = vadd.f32 %v981_v37, %v963_v45  ;;  %v984_v17 = vadd.f32 %v982_v31, %v964_v13 }
 0x221   : > { %v997_v25 = vmul.f32 %v992_v14, %v987_v29  ;;  %v998_v20 = vmul.f32 %v996_v58, %v987_v29 }
 0x223   : > { %v999_v43 = vadd.f32 %v997_v25, %v983_v63  ;;  %v1000_v38 = vadd.f32 %v998_v20, %v984_v17 }
 0x225   : > { %v1005_v48 = vpop.permute.xlu1 %1004 }
 0x226   : > { %v1007_v27 = vadd.f32 %v1005_v48, %v999_v43  ;;  %v1008_v56 = vadd.f32 %v1005_v48, %v1000_v38 }
 0x228   : > { %v1009_v59 = vmax.f32 %v1007_v27, 0.0  ;;  %v1010_v23 = vmax.f32 %v1008_v56, 0.0 }
 0x22a   : > { %1011 = vst [vmem:[%s186_s30] sm:$0xff] %v1009_v59  ;;  %1012 = vst [vmem:[%s186_s30 + $0x8] sm:$0xff] %v1010_v23 }
 0x22b   : > { %1252 = shalt.err (!%p1249_p4)
}
 0x22c   : > { %s1253_s29 = scalar_lea.hbm %s2231_s23, 256  ;;  %s1257_s19 = scalar_lea.hbm %s2278_s3, 512 }
 0x22d   : > { %p1254_p5 = scmp.ne.s32.totalorder %s2231_s23, %s1253_s29  ;;  %p1258_p0 = scmp.lt.u32.totalorder %s2231_s23, %s2278_s3 }
 0x22e   : > { %p1259_p1 = scmp.lt.u32.totalorder %s1257_s19, %s1253_s29  ;;  %p1261_p6 = scmp.lt.u32.totalorder %s1253_s29, %s2231_s23 }
 0x22f   : > { %p1255_p8 = pnand %p1254_p5, %p2311_p11 }
 0x230   : > { %p1260_p3 = por %p1259_p1, %p1258_p0 }
 0x231   : > { %p1256_p9 = pneg %p1255_p8 }
 0x232   : > { %p1262_p12 = por %p1261_p6, %p1260_p3 }
 0x234   : > { %p1263_p13 = pnand %p1262_p12, %p1256_p9 }
 0x236   : > { %1266 = shalt.err (!%p1263_p13)
}
 0x237   : > { %1122 = dma.vmem_to_hbm [thread:$0]  (%p2311_p11), %s2233_s5, 256, %s2231_s23, %s1014_s6  }
 0x238 PF: > { %s1040_s26 = sand.u32 1, %s1293_s12   ;;  %p2312_p7 = scmp.ne.s32.totalorder %s2290_s25, 0 }
 0x239   : > { %p2313_p10 = scmp.ge.s32.totalorder %s1305_s15, 2  ;;  %s1041_s27 = scalar_lea.sflag [#allocation5], %s1040_s26 }
 0x23b   : > { %p1129_p2 = pnand %p2313_p10, %p2312_p7 }
 0x23d   : > { %1288 = dma.done.wait (!%p1129_p2), %s1041_s27, 256  }
 0x23e   : > { %1290 = vsyncadd (!%p1129_p2), %s1041_s27, 4294967040  ;;  %p16_p4 = scmp.ge.s32.totalorder %s1386_s18, 4   ;;  %s2314_s12 = smov %s1297_s13 }
 0x23f   : > { %s2315_s13 = smov %s1301_s14  ;;  %s2316_s14 = smov %s1398_s21 }
 0x240   : > { %s2317_s15 = smov %s1386_s18  ;;  %18 = sbr.rel (!%p16_p4) target bundleno = 5 (0x5), region = 77 }
 0x247   :  { %1046 = vsyncpa [#allocation4], 1 }
 0x248   :  { %1048 = vsyncpa [#allocation4 + $0x1], 1 }
 0x249   :  { %1049 = vsyncpa [#allocation5], 1 }
 0x24a   :  { %1051 = vsyncpa [#allocation5 + $0x1], 1 }

</bundles_post_ra>
